<compile_context>
chip_gen: v5e
topology: v5e:2x2
jax: 0.10.0
libtpu: 0.0.40
codegen_flags: <defaults>
</compile_context>

<pallas_src>
import functools

import jax
import jax.numpy as jnp
from jax import lax
from jax.experimental import pallas as pl
from jax.experimental.pallas import tpu as pltpu

OUT_PAD = 128  # lane-dense output slab width (one 128-lane tile)


def gat_kernel(x_ref, gsrc_ref, gdst_ref, w1_ref, b1_ref, w2_ref, b2_ref,
               out_ref, *, hidden_dim, out_pad):
    f32 = jnp.float32
    bf16 = jnp.bfloat16

    x = x_ref[...]          # [N, in]   f32
    gsrc = gsrc_ref[...]    # [E, N]    bf16 one-hot of edge source (exact 0/1)
    gdst = gdst_ref[...]    # [E, N]    bf16 one-hot of edge target (exact 0/1)

    # gdst^T @ rhs without materializing the transpose: contract over axis 0.
    dn = (((0,), (0,)), ((), ()))

    def scatter_add(rhs_bf16):                       # [E, C] bf16 -> [N, C] f32
        return lax.dot_general(gdst, rhs_bf16, dn, preferred_element_type=f32)

    def gat_layer(feat, w_fused, bias, msg_cols, a_src_col, a_dst_col):
        # Fused projection (f32 MXU): z = feat @ [W | W@att_src | W@att_dst].
        z = jnp.dot(feat, w_fused, preferred_element_type=f32)      # [N, C]
        zb = z.astype(bf16)                                         # bf16 MXU feed
        gather_cols = max(msg_cols, a_src_col + 1)

        # ONE gather through gsrc feeds both the per-edge source features and
        # the a_src logit column (gsrc streams through the MXU once per layer).
        g = jnp.dot(gsrc, zb[:, :gather_cols],
                    preferred_element_type=f32)                     # [E, gather_cols]
        a_src_e = g[:, a_src_col:a_src_col + 1]                     # [E, 1]
        a_dst_e = jnp.dot(gdst, zb[:, a_dst_col:a_dst_col + 1],
                          preferred_element_type=f32)               # [E, 1]

        e = a_src_e + a_dst_e
        e = jnp.where(e > 0.0, e, 0.2 * e)                          # LeakyReLU(0.2)
        # Global-max shift is invariant within each dst group, so this equals
        # PyG's per-group softmax (denom clamp below guards exp underflow).
        e = e - jnp.max(e, axis=0, keepdims=True)
        w = jnp.exp(e)                                              # [E, 1]

        # Post-normalization: scatter un-normalized messages + weights, then
        # divide once per dst node (no denom gather-back, no per-edge divide).
        msg = (w * g[:, :msg_cols]).astype(bf16)                    # [E, msg_cols]
        num = scatter_add(msg)                                      # [N, msg_cols]
        denom = scatter_add(w.astype(bf16))                         # [N, 1]
        inv = pl.reciprocal(jnp.maximum(denom, 1e-12), approx=True)
        return num * inv + bias

    # conv1 -> ELU -> conv2
    h = gat_layer(x, w1_ref[...], b1_ref[...],
                  msg_cols=hidden_dim, a_src_col=hidden_dim, a_dst_col=hidden_dim + 1)
    h = jnp.where(h > 0.0, h, jnp.exp(jnp.minimum(h, 0.0)) - 1.0)   # ELU(alpha=1)
    out_ref[...] = gat_layer(h, w2_ref[...], b2_ref[...],
                             msg_cols=out_pad, a_src_col=out_pad - 2,
                             a_dst_col=out_pad - 1)                 # lane-dense store


def init_params(key, input_dim, hidden_dim, output_dim):
    """Glorot-uniform weights / attention vectors, small uniform biases."""
    def glorot(k, shape):
        bound = jnp.sqrt(6.0 / (shape[0] + shape[1]))
        return jax.random.uniform(k, shape, jnp.float32, -bound, bound)

    ks = jax.random.split(key, 8)
    return {
        "w1": glorot(ks[0], (input_dim, hidden_dim)),
        "att_src1": glorot(ks[1], (hidden_dim, 1)),
        "att_dst1": glorot(ks[2], (hidden_dim, 1)),
        "b1": jax.random.uniform(ks[3], (hidden_dim,), jnp.float32, -0.1, 0.1),
        "w2": glorot(ks[4], (hidden_dim, output_dim)),
        "att_src2": glorot(ks[5], (output_dim, 1)),
        "att_dst2": glorot(ks[6], (output_dim, 1)),
        "b2": jax.random.uniform(ks[7], (output_dim,), jnp.float32, -0.1, 0.1),
    }


def _add_self_loops(edge_index, num_nodes):
    # GATConv default add_self_loops=True (input below is built with no self loops).
    loops = jnp.arange(num_nodes, dtype=edge_index.dtype)
    src = jnp.concatenate([edge_index[0], loops])
    dst = jnp.concatenate([edge_index[1], loops])
    return src, dst


def _vmem_budget_bytes(n, e, in_dim, hidden_dim):
    """Footprint-derived VMEM budget, capped below v7x's 64 MiB per-TC VMEM."""
    one_hots = 2 * e * n * 2                                  # gsrc + gdst (bf16)
    node_f32 = n * (in_dim + hidden_dim + 3 * OUT_PAD) * 4    # x, h, z2, out, num
    edge_f32 = e * (2 * OUT_PAD + 8) * 4                      # gather results + logits
    est = 2 * (one_hots + node_f32 + edge_f32) + (4 << 20)    # 2x headroom + slack
    return max(16 << 20, min(est, 48 << 20))


def gat_forward(x, edge_index, params):
    N = x.shape[0]
    H = params["w1"].shape[1]
    O = params["w2"].shape[1]

    src, dst = _add_self_loops(edge_index, N)
    E = src.shape[0]
    gsrc = jax.nn.one_hot(src, N, dtype=jnp.bfloat16)   # [E, N]
    gdst = jax.nn.one_hot(dst, N, dtype=jnp.bfloat16)   # [E, N]

    # Layer-1 fused weights: [W1 | W1@att_src1 | W1@att_dst1]  -> [in, H+2]
    w1f = jnp.concatenate(
        [params["w1"],
         params["w1"] @ params["att_src1"],
         params["w1"] @ params["att_dst1"]], axis=1)
    b1 = params["b1"].reshape(1, H)

    # Layer-2 fused weights packed into exactly ONE 128-lane tile:
    #   cols [0, O): W2, cols [O, 126): 0, col 126: W2@att_src2, col 127: W2@att_dst2.
    w2f = jnp.zeros((H, OUT_PAD), jnp.float32)
    w2f = w2f.at[:, :O].set(params["w2"])
    w2f = w2f.at[:, OUT_PAD - 2:OUT_PAD - 1].set(params["w2"] @ params["att_src2"])
    w2f = w2f.at[:, OUT_PAD - 1:OUT_PAD].set(params["w2"] @ params["att_dst2"])
    b2 = jnp.zeros((1, OUT_PAD), jnp.float32).at[:, :O].set(params["b2"].reshape(1, O))

    vmem = pl.BlockSpec(memory_space=pltpu.MemorySpace.VMEM)
    kernel = functools.partial(gat_kernel, hidden_dim=H, out_pad=OUT_PAD)
    out_padded = pl.pallas_call(
        kernel,
        out_shape=jax.ShapeDtypeStruct((N, OUT_PAD), jnp.float32),
        in_specs=[vmem] * 7,
        out_specs=vmem,
        compiler_params=pltpu.CompilerParams(
            vmem_limit_bytes=_vmem_budget_bytes(N, E, x.shape[1], H)),
    )(x, gsrc, gdst, w1f, b1, w2f, b2)
    return out_padded[:, :O]


def gat_ref(x, edge_index, params):
    """Pure-JAX reference mirroring PyG GATConv (heads=1) -> ELU -> GATConv."""
    N = x.shape[0]
    src, dst = _add_self_loops(edge_index, N)

    def conv(feat, W, a_s, a_d, b):
        xl = feat @ W
        asrc = (xl @ a_s)[:, 0]
        adst = (xl @ a_d)[:, 0]
        e = asrc[src] + adst[dst]
        e = jnp.where(e > 0.0, e, 0.2 * e)
        m = jnp.full((N,), -jnp.inf, jnp.float32).at[dst].max(e)   # per-dst max
        w = jnp.exp(e - m[dst])
        denom = jnp.zeros((N,), jnp.float32).at[dst].add(w)
        alpha = w / denom[dst]
        msg = alpha[:, None] * xl[src]
        return jnp.zeros((N, W.shape[1]), jnp.float32).at[dst].add(msg) + b.reshape(1, -1)

    h = conv(x, params["w1"], params["att_src1"], params["att_dst1"], params["b1"])
    h = jnp.where(h > 0.0, h, jnp.exp(jnp.minimum(h, 0.0)) - 1.0)
    return conv(h, params["w2"], params["att_src2"], params["att_dst2"], params["b2"])


if __name__ == "__main__":
    N, E = 64, 128
    input_dim, hidden_dim, output_dim = 8, 32, 4

    key = jax.random.PRNGKey(0)
    kx, ke, kp = jax.random.split(key, 3)
    x = jax.random.normal(kx, (N, input_dim), jnp.float32)

    # Random edges with no self-loops (so wrapper's add_self_loops matches PyG exactly).
    src = jax.random.randint(ke, (E,), 0, N, jnp.int32)
    off = jax.random.randint(jax.random.fold_in(ke, 1), (E,), 1, N, jnp.int32)
    dst = (src + off) % N
    edge_index = jnp.stack([src, dst])

    params = init_params(kp, input_dim, hidden_dim, output_dim)

    out = jax.block_until_ready(gat_forward(x, edge_index, params))
    ref = gat_ref(x, edge_index, params)

    assert out.shape == (N, output_dim)
    assert bool(jnp.all(jnp.isfinite(out)))
    # bf16 MXU feeds + approx reciprocal => ~1e-3-level deviation from the f32 ref.
    assert bool(jnp.allclose(out, ref, rtol=1e-2, atol=1e-2)), \
        f"max abs diff {float(jnp.max(jnp.abs(out - ref)))}"
    print("KERNEL_OK")
</pallas_src>

<mosaic_0001>
module attributes {stable_mosaic.version = 11 : i64} {
  func.func @gat_kernel(%arg0: memref<64x8xf32, #tpu.memory_space<vmem>>, %arg1: memref<192x64xbf16, #tpu.memory_space<vmem>>, %arg2: memref<192x64xbf16, #tpu.memory_space<vmem>>, %arg3: memref<8x34xf32, #tpu.memory_space<vmem>>, %arg4: memref<1x32xf32, #tpu.memory_space<vmem>>, %arg5: memref<32x128xf32, #tpu.memory_space<vmem>>, %arg6: memref<1x128xf32, #tpu.memory_space<vmem>>, %arg7: memref<64x128xf32, #tpu.memory_space<vmem>>) attributes {dimension_semantics = [], scalar_prefetch = 0 : i64, scratch_operands = 0 : i64, tpu.core_type = #tpu.core_type<tc>} {
    %c0 = arith.constant 0 : index
    %c0_0 = arith.constant 0 : index
    %0 = vector.load %arg0[%c0, %c0_0] : memref<64x8xf32, #tpu.memory_space<vmem>>, vector<64x8xf32>
    %c0_1 = arith.constant 0 : index
    %c0_2 = arith.constant 0 : index
    %1 = vector.load %arg1[%c0_1, %c0_2] : memref<192x64xbf16, #tpu.memory_space<vmem>>, vector<192x64xbf16>
    %c0_3 = arith.constant 0 : index
    %c0_4 = arith.constant 0 : index
    %2 = vector.load %arg2[%c0_3, %c0_4] : memref<192x64xbf16, #tpu.memory_space<vmem>>, vector<192x64xbf16>
    %c0_5 = arith.constant 0 : index
    %c0_6 = arith.constant 0 : index
    %3 = vector.load %arg3[%c0_5, %c0_6] : memref<8x34xf32, #tpu.memory_space<vmem>>, vector<8x34xf32>
    %c0_7 = arith.constant 0 : index
    %c0_8 = arith.constant 0 : index
    %4 = vector.load %arg4[%c0_7, %c0_8] : memref<1x32xf32, #tpu.memory_space<vmem>>, vector<1x32xf32>
    %cst = arith.constant dense<0.000000e+00> : vector<64x34xf32>
    %5 = tpu.matmul %0, %3, %cst {dimension_numbers = #tpu.dot_dimension_numbers<[1], [0], [0], [1], [0, 0, 1, 1], [], []>} : vector<64x8xf32>, vector<8x34xf32>, vector<64x34xf32> -> vector<64x34xf32>
    %6 = arith.truncf %5 : vector<64x34xf32> to vector<64x34xbf16>
    %7 = vector.extract_strided_slice %6 {offsets = [0, 0], sizes = [64, 33], strides = [1, 1]} : vector<64x34xbf16> to vector<64x33xbf16>
    %cst_9 = arith.constant dense<0.000000e+00> : vector<192x33xf32>
    %8 = tpu.matmul %1, %7, %cst_9 {dimension_numbers = #tpu.dot_dimension_numbers<[1], [0], [0], [1], [0, 0, 1, 1], [], []>} : vector<192x64xbf16>, vector<64x33xbf16>, vector<192x33xf32> -> vector<192x33xf32>
    %9 = vector.extract_strided_slice %8 {offsets = [0, 32], sizes = [192, 1], strides = [1, 1]} : vector<192x33xf32> to vector<192x1xf32>
    %10 = vector.extract_strided_slice %6 {offsets = [0, 33], sizes = [64, 1], strides = [1, 1]} : vector<64x34xbf16> to vector<64x1xbf16>
    %cst_10 = arith.constant dense<0.000000e+00> : vector<192x1xf32>
    %11 = tpu.matmul %2, %10, %cst_10 {dimension_numbers = #tpu.dot_dimension_numbers<[1], [0], [0], [1], [0, 0, 1, 1], [], []>} : vector<192x64xbf16>, vector<64x1xbf16>, vector<192x1xf32> -> vector<192x1xf32>
    %12 = arith.addf %9, %11 : vector<192x1xf32>
    %cst_11 = arith.constant 0.000000e+00 : f32
    %13 = vector.broadcast %cst_11 : f32 to vector<192x1xf32>
    %14 = arith.cmpf ogt, %12, %13 : vector<192x1xf32>
    %cst_12 = arith.constant 2.000000e-01 : f32
    %15 = vector.broadcast %cst_12 : f32 to vector<192x1xf32>
    %16 = arith.mulf %15, %12 : vector<192x1xf32>
    %17 = arith.select %14, %12, %16 : vector<192x1xi1>, vector<192x1xf32>
    %cst_13 = arith.constant dense<0xFF800000> : vector<1xf32>
    %18 = vector.multi_reduction <maximumf>, %17, %cst_13 [0] : vector<192x1xf32> to vector<1xf32>
    %19 = vector.shape_cast %18 : vector<1xf32> to vector<1x1xf32>
    %20 = vector.broadcast %19 : vector<1x1xf32> to vector<192x1xf32>
    %21 = arith.subf %17, %20 : vector<192x1xf32>
    %22 = math.exp %21 : vector<192x1xf32>
    %23 = vector.extract_strided_slice %8 {offsets = [0, 0], sizes = [192, 32], strides = [1, 1]} : vector<192x33xf32> to vector<192x32xf32>
    %24 = vector.broadcast %22 : vector<192x1xf32> to vector<192x32xf32>
    %25 = arith.mulf %24, %23 : vector<192x32xf32>
    %26 = arith.truncf %25 : vector<192x32xf32> to vector<192x32xbf16>
    %cst_14 = arith.constant dense<0.000000e+00> : vector<64x32xf32>
    %27 = tpu.matmul %2, %26, %cst_14 {dimension_numbers = #tpu.dot_dimension_numbers<[0], [0], [1], [1], [0, 1, 1, 1], [], []>} : vector<192x64xbf16>, vector<192x32xbf16>, vector<64x32xf32> -> vector<64x32xf32>
    %28 = arith.truncf %22 : vector<192x1xf32> to vector<192x1xbf16>
    %cst_15 = arith.constant dense<0.000000e+00> : vector<64x1xf32>
    %29 = tpu.matmul %2, %28, %cst_15 {dimension_numbers = #tpu.dot_dimension_numbers<[0], [0], [1], [1], [0, 1, 1, 1], [], []>} : vector<192x64xbf16>, vector<192x1xbf16>, vector<64x1xf32> -> vector<64x1xf32>
    %cst_16 = arith.constant 9.99999996E-13 : f32
    %30 = vector.broadcast %cst_16 : f32 to vector<64x1xf32>
    %31 = arith.maximumf %29, %30 : vector<64x1xf32>
    %32 = tpu.reciprocal %31 {approx = true} : vector<64x1xf32> -> vector<64x1xf32>
    %33 = vector.broadcast %32 : vector<64x1xf32> to vector<64x32xf32>
    %34 = arith.mulf %27, %33 : vector<64x32xf32>
    %35 = vector.broadcast %4 : vector<1x32xf32> to vector<64x32xf32>
    %36 = arith.addf %34, %35 : vector<64x32xf32>
    %cst_17 = arith.constant 0.000000e+00 : f32
    %37 = vector.broadcast %cst_17 : f32 to vector<64x32xf32>
    %38 = arith.cmpf ogt, %36, %37 : vector<64x32xf32>
    %cst_18 = arith.constant 0.000000e+00 : f32
    %39 = vector.broadcast %cst_18 : f32 to vector<64x32xf32>
    %40 = arith.minimumf %36, %39 : vector<64x32xf32>
    %41 = math.exp %40 : vector<64x32xf32>
    %cst_19 = arith.constant 1.000000e+00 : f32
    %42 = vector.broadcast %cst_19 : f32 to vector<64x32xf32>
    %43 = arith.subf %41, %42 : vector<64x32xf32>
    %44 = arith.select %38, %36, %43 : vector<64x32xi1>, vector<64x32xf32>
    %c0_20 = arith.constant 0 : index
    %c0_21 = arith.constant 0 : index
    %45 = vector.load %arg5[%c0_20, %c0_21] : memref<32x128xf32, #tpu.memory_space<vmem>>, vector<32x128xf32>
    %c0_22 = arith.constant 0 : index
    %c0_23 = arith.constant 0 : index
    %46 = vector.load %arg6[%c0_22, %c0_23] : memref<1x128xf32, #tpu.memory_space<vmem>>, vector<1x128xf32>
    %cst_24 = arith.constant dense<0.000000e+00> : vector<64x128xf32>
    %47 = tpu.matmul %44, %45, %cst_24 {dimension_numbers = #tpu.dot_dimension_numbers<[1], [0], [0], [1], [0, 0, 1, 1], [], []>} : vector<64x32xf32>, vector<32x128xf32>, vector<64x128xf32> -> vector<64x128xf32>
    %48 = arith.truncf %47 : vector<64x128xf32> to vector<64x128xbf16>
    %cst_25 = arith.constant dense<0.000000e+00> : vector<192x128xf32>
    %49 = tpu.matmul %1, %48, %cst_25 {dimension_numbers = #tpu.dot_dimension_numbers<[1], [0], [0], [1], [0, 0, 1, 1], [], []>} : vector<192x64xbf16>, vector<64x128xbf16>, vector<192x128xf32> -> vector<192x128xf32>
    %50 = vector.extract_strided_slice %49 {offsets = [0, 126], sizes = [192, 1], strides = [1, 1]} : vector<192x128xf32> to vector<192x1xf32>
    %51 = vector.extract_strided_slice %48 {offsets = [0, 127], sizes = [64, 1], strides = [1, 1]} : vector<64x128xbf16> to vector<64x1xbf16>
    %cst_26 = arith.constant dense<0.000000e+00> : vector<192x1xf32>
    %52 = tpu.matmul %2, %51, %cst_26 {dimension_numbers = #tpu.dot_dimension_numbers<[1], [0], [0], [1], [0, 0, 1, 1], [], []>} : vector<192x64xbf16>, vector<64x1xbf16>, vector<192x1xf32> -> vector<192x1xf32>
    %53 = arith.addf %50, %52 : vector<192x1xf32>
    %cst_27 = arith.constant 0.000000e+00 : f32
    %54 = vector.broadcast %cst_27 : f32 to vector<192x1xf32>
    %55 = arith.cmpf ogt, %53, %54 : vector<192x1xf32>
    %cst_28 = arith.constant 2.000000e-01 : f32
    %56 = vector.broadcast %cst_28 : f32 to vector<192x1xf32>
    %57 = arith.mulf %56, %53 : vector<192x1xf32>
    %58 = arith.select %55, %53, %57 : vector<192x1xi1>, vector<192x1xf32>
    %cst_29 = arith.constant dense<0xFF800000> : vector<1xf32>
    %59 = vector.multi_reduction <maximumf>, %58, %cst_29 [0] : vector<192x1xf32> to vector<1xf32>
    %60 = vector.shape_cast %59 : vector<1xf32> to vector<1x1xf32>
    %61 = vector.broadcast %60 : vector<1x1xf32> to vector<192x1xf32>
    %62 = arith.subf %58, %61 : vector<192x1xf32>
    %63 = math.exp %62 : vector<192x1xf32>
    %64 = vector.broadcast %63 : vector<192x1xf32> to vector<192x128xf32>
    %65 = arith.mulf %64, %49 : vector<192x128xf32>
    %66 = arith.truncf %65 : vector<192x128xf32> to vector<192x128xbf16>
    %cst_30 = arith.constant dense<0.000000e+00> : vector<64x128xf32>
    %67 = tpu.matmul %2, %66, %cst_30 {dimension_numbers = #tpu.dot_dimension_numbers<[0], [0], [1], [1], [0, 1, 1, 1], [], []>} : vector<192x64xbf16>, vector<192x128xbf16>, vector<64x128xf32> -> vector<64x128xf32>
    %68 = arith.truncf %63 : vector<192x1xf32> to vector<192x1xbf16>
    %cst_31 = arith.constant dense<0.000000e+00> : vector<64x1xf32>
    %69 = tpu.matmul %2, %68, %cst_31 {dimension_numbers = #tpu.dot_dimension_numbers<[0], [0], [1], [1], [0, 1, 1, 1], [], []>} : vector<192x64xbf16>, vector<192x1xbf16>, vector<64x1xf32> -> vector<64x1xf32>
    %cst_32 = arith.constant 9.99999996E-13 : f32
    %70 = vector.broadcast %cst_32 : f32 to vector<64x1xf32>
    %71 = arith.maximumf %69, %70 : vector<64x1xf32>
    %72 = tpu.reciprocal %71 {approx = true} : vector<64x1xf32> -> vector<64x1xf32>
    %73 = vector.broadcast %72 : vector<64x1xf32> to vector<64x128xf32>
    %74 = arith.mulf %67, %73 : vector<64x128xf32>
    %75 = vector.broadcast %46 : vector<1x128xf32> to vector<64x128xf32>
    %76 = arith.addf %74, %75 : vector<64x128xf32>
    %c0_33 = arith.constant 0 : index
    %c0_34 = arith.constant 0 : index
    %77 = vector.load %arg7[%c0_33, %c0_34] : memref<64x128xf32, #tpu.memory_space<vmem>>, vector<64x128xf32>
    tpu.vector_store %arg7[%c0_33, %c0_34], %76 {strides = array<i32>} : memref<64x128xf32, #tpu.memory_space<vmem>>, vector<64x128xf32>,
    return
  }
}

</mosaic_0001>

<bundles_post_ra>
// kernel: tpu_custom_call.1
= control target key start
LH: loop header
LB: loop body
LE: loop exit
PB: predicated region body
PF: predicated region fallthrough
CT: control target
= control target key end

     0   :  { %vm86_vm0 = vcmask 64512   ;;  %s4050_s0 = inlined_call_operand.vmem [shape: f32[64,8], index: 0, kind: input, shape index: {}]   ;;  %s4051_s1 = inlined_call_operand.vmem [shape: bf16[192,64], index: 1, kind: input, shape index: {}]   ;;  %s4052_s2 = inlined_call_operand.vmem [shape: bf16[192,64], index: 2, kind: input, shape index: {}]   ;;  %s4053_s3 = inlined_call_operand.vmem [shape: f32[8,34], index: 3, kind: input, shape index: {}]   ;;  %s4054_s4 = inlined_call_operand.vmem [shape: f32[1,32], index: 4, kind: input, shape index: {}]   ;;  %s4055_s5 = inlined_call_operand.vmem [shape: f32[32,128], index: 5, kind: input, shape index: {}]   ;;  %s4056_s6 = inlined_call_operand.vmem [shape: f32[1,128], index: 6, kind: input, shape index: {}]   ;;  %s4057_s7 = inlined_call_operand.hbm [shape: f32[64,128], index: 7, kind: output, shape index: {}]  }
   0x1   :  { %v84_v0 = vld [vmem:[%s4053_s3] sm:$0xff] }
   0x2   :  { %v28_v1 = vld [vmem:[%s4050_s0] sm:$0xff]  ;;  %126 = vmatpush.msra.mxu0 %v84_v0  ;;  %2568 = vmatpush.msra.mxu3 %v84_v0 }
   0x3   :  { %v32_v2 = vld [vmem:[%s4050_s0 + $0x20] sm:$0xff]  ;;  %2360 = vmatmul.msk.f32.vlgmr.msra.gmra.mxu0 %vm86_vm0, %v28_v1 }
   0x4   :  { %2364 = vmatmul.msk.f32.vlgmr.msra.gmra.mxu3 %vm86_vm0, %v32_v2 }
   0x5   :  { %12 = vsyncpa [#allocation3], 0  ;;  %v29_v3 = vld [vmem:[%s4050_s0 + $0x8] sm:$0xff]  ;;  %v30_v5 = vld [vmem:[%s4050_s0 + $0x10] sm:$0xff]  ;;  %vm244_vm1 = vcmask 523264   ;;  %s2827_s25 = smov 32  }
   0x6   :  { %v33_v4 = vld [vmem:[%s4050_s0 + $0x28] sm:$0xff]  ;;  %v34_v6 = vld [vmem:[%s4050_s0 + $0x30] sm:$0xff]  ;;  %v31_v7 = vld [vmem:[%s4050_s0 + $0x18] sm:$0xff]  ;;  %vm719_vm8 = vcmask 269568   ;;  %s2348_s28 = sshll.u32 %s4057_s7, 4  ;;  %s2836_s29 = smov 128   ;;  %s2349_s28 = int_to_ptr.hbm [resolvable:$true] %s2348_s28 }
   0x7   :  { %v35_v8 = vld [vmem:[%s4050_s0 + $0x38] sm:$0xff]  ;;  %s2826_s0 = smov 95   ;;  %v2554_v37 = vld [vmem:[%s4051_s1 + $0x50] sm:$0xff]  ;;  %v2925_v43 = vld [vmem:[%s4052_s2] sm:$0xff]  ;;  %s2837_s30 = smov 8  }
   0x8   :  { %v2555_v38 = vld [vmem:[%s4051_s1 + $0x58] sm:$0xff]  ;;  %v2932_v44 = vld [vmem:[%s4052_s2 + $0x8] sm:$0xff]  ;;  %v2939_v45 = vld [vmem:[%s4052_s2 + $0x10] sm:$0xff] }
   0x9   :  { %v2946_v46 = vld [vmem:[%s4052_s2 + $0x18] sm:$0xff]  ;;  %v2953_v47 = vld [vmem:[%s4052_s2 + $0x20] sm:$0xff]  ;;  %v2562_v50 = vld [vmem:[%s4052_s2 + $0x30] sm:$0xff] }
   0xa   :  { %4100 = vst [vmem:[#allocation5_spill] sm:$0xff] %v2946_v46  ;;  %v2544_v48 = vld [vmem:[%s4051_s1] sm:$0xff]  ;;  %v2563_v49 = vld [vmem:[%s4052_s2 + $0x38] sm:$0xff]  ;;  %v2970_v51 = vld [vmem:[%s4052_s2 + $0x28] sm:$0xff] }
   0xb   :  { %2361 = vmatmul.msk.f32.gmra.mxu0 %vm86_vm0, %v29_v3  ;;  %4101 = vst [vmem:[#allocation6_spill] sm:$0xff] %v2953_v47  ;;  %v2545_v52 = vld [vmem:[%s4051_s1 + $0x8] sm:$0xff]  ;;  %v2546_v54 = vld [vmem:[%s4051_s1 + $0x10] sm:$0xff]  ;;  %v2547_v56 = vld [vmem:[%s4051_s1 + $0x18] sm:$0xff] }
   0xc   :  { %2365 = vmatmul.msk.f32.gmra.mxu3 %vm86_vm0, %v33_v4  ;;  %4102 = vst [vmem:[#allocation7_spill] sm:$0xff] %v2970_v51  ;;  %v3005_v59 = vld [vmem:[%s4052_s2 + $0x40] sm:$0xff]  ;;  %v3018_v63 = vld [vmem:[%s4052_s2 + $0x48] sm:$0xff]  ;;  %v3031_v3 = vld [vmem:[%s4052_s2 + $0x50] sm:$0xff] }
   0xd   :  { %v2548_v60 = vld [vmem:[%s4051_s1 + $0x20] sm:$0xff]  ;;  %v2549_v0 = vld [vmem:[%s4051_s1 + $0x28] sm:$0xff]  ;;  %v2550_v4 = vld [vmem:[%s4051_s1 + $0x30] sm:$0xff] }
  0x13   :  { %2362 = vmatmul.msk.f32.gmra.mxu0 %vm86_vm0, %v30_v5 }
  0x14   :  { %2366 = vmatmul.msk.f32.gmra.mxu3 %vm86_vm0, %v34_v6 }
  0x1b   :  { %2363 = vmatmul.msk.f32.gmra.mxu0 %vm86_vm0, %v31_v7  ;;  %v3044_v7 = vld [vmem:[%s4052_s2 + $0x58] sm:$0xff] }
  0x1c   :  { %2367 = vmatmul.msk.f32.gmra.mxu3 %vm86_vm0, %v35_v8  ;;  %v2551_v8 = vld [vmem:[%s4051_s1 + $0x38] sm:$0xff] }
  0x80   :  { %v128_v9 = vpop.f32.mrf.mxu0 }
  0x81   :  { %v152_v20 = vpack.c.bf16 %v128_v9, %v128_v9 }
  0x83   :  { %v228_v27 = vunpack.c.l.b16 %v152_v20 }
  0x87   :  { %v140_v10 = vpop.f32.mrf.mxu3 }
  0x88   :  { %v131_v11 = vpop.f32.mrf.mxu0  ;;  %v156_v28 = vpack.c.bf16 %v140_v10, %v140_v10 }
  0x89   :  { %v153_v21 = vpack.c.bf16 %v131_v11, %v131_v11  ;;  %v2552_v11 = vld [vmem:[%s4051_s1 + $0x40] sm:$0xff] }
  0x8a   :  { %v232_v34 = vunpack.c.l.b16 %v156_v28 }
  0x8b   :  { %v229_v29 = vunpack.c.l.b16 %v153_v21 }
  0x8d   :  { %v236_v35 = vpack.c.b16 %v229_v29, %v228_v27 }
  0x8f   :  { %v143_v12 = vpop.f32.mrf.mxu3 }
  0x90   :  { %v134_v13 = vpop.f32.mrf.mxu0  ;;  %v157_v25 = vpack.c.bf16 %v143_v12, %v143_v12 }
  0x91   :  { %v154_v14 = vpack.c.bf16 %v134_v13, %v134_v13 }
  0x92   :  { %v233_v32 = vunpack.c.l.b16 %v157_v25 }
  0x93   :  { %v230_v17 = vunpack.c.l.b16 %v154_v14  ;;  %v2553_v14 = vld [vmem:[%s4051_s1 + $0x48] sm:$0xff] }
  0x94   :  { %v238_v36 = vpack.c.b16 %v233_v32, %v232_v34 }
  0x97   :  { %v146_v15 = vpop.f32.mrf.mxu3 }
  0x98   :  { %v137_v16 = vpop.f32.mrf.mxu0  ;;  %v158_v22 = vpack.c.bf16 %v146_v15, %v146_v15 }
  0x99   :  { %v155_v18 = vpack.c.bf16 %v137_v16, %v137_v16 }
  0x9a   :  { %v234_v30 = vunpack.c.l.b16 %v158_v22 }
  0x9b   :  { %v231_v19 = vunpack.c.l.b16 %v155_v18 }
  0x9d   :  { %v237_v23 = vpack.c.b16 %v231_v19, %v230_v17 }
  0x9f   :  { %v149_v24 = vpop.f32.mrf.mxu3  ;;  %412 = vrot.lane.b32.xlu1 %v237_v23, %s2826_s0 }
  0xa0   :  { %v159_v26 = vpack.c.bf16 %v149_v24, %v149_v24 }
  0xa2   :  { %v235_v31 = vunpack.c.l.b16 %v159_v26 }
  0xa4   :  { %v239_v33 = vpack.c.b16 %v235_v31, %v234_v30 }
  0xa6   :  { %416 = vrot.lane.b32.xlu0 %v239_v33, %s2826_s0  ;;  %285 = vmatpush.bf16.msra.mxu1 %v239_v33 }
  0xa7   :  { %2569 = vmatpush.bf16.msra.mxu2 %v239_v33  ;;  %410 = vrot.lane.b32.xlu1 %v236_v35, %s2826_s0 }
  0xaa   :  { %286 = vmatpush.bf16.msra.mxu1 %v238_v36 }
  0xab   :  { %2570 = vmatpush.bf16.msra.mxu2 %v238_v36 }
  0xae   :  { %414 = vrot.lane.b32.xlu0 %v238_v36, %s2826_s0  ;;  %287 = vmatpush.bf16.msra.mxu1 %v237_v23  ;;  %s2829_s0 = smov 96  }
  0xaf   :  { %2571 = vmatpush.bf16.msra.mxu2 %v237_v23 }
  0xb2   :  { %288 = vmatpush.bf16.msra.mxu1 %v236_v35 }
  0xb3   :  { %2572 = vmatpush.bf16.msra.mxu2 %v236_v35 }
  0xb5   :  { %2416 = vmatmul.msk.bf16.vlgmr.msra.gmra.mxu1 %vm244_vm1, %v2544_v48 }
  0xb6   :  { %2426 = vmatmul.msk.bf16.vlgmr.msra.gmra.mxu2 %vm244_vm1, %v2554_v37 }
  0xc5   :  { %2417 = vmatmul.msk.bf16.gmra.mxu1 %vm244_vm1, %v2545_v52 }
  0xc6   :  { %2427 = vmatmul.msk.bf16.gmra.mxu2 %vm244_vm1, %v2555_v38 }
  0xd5   :  { %2418 = vmatmul.msk.bf16.gmra.mxu1 %vm244_vm1, %v2546_v54 }
  0xe5   :  { %2419 = vmatmul.msk.bf16.gmra.mxu1 %vm244_vm1, %v2547_v56 }
  0xf5   :  { %2420 = vmatmul.msk.bf16.gmra.mxu1 %vm244_vm1, %v2548_v60 }
 0x105   :  { %2421 = vmatmul.msk.bf16.gmra.mxu1 %vm244_vm1, %v2549_v0 }
 0x111   :  { %v413_v40 = vpop.permute.xlu1 %412 }
 0x115   :  { %2422 = vmatmul.msk.bf16.gmra.mxu1 %vm244_vm1, %v2550_v4 }
 0x118   :  { %v417_v39 = vpop.permute.xlu0 %416 }
 0x119   :  { %462 = vmatpush.bf16.msra.mxu2 %v417_v39  ;;  %v411_v42 = vpop.permute.xlu1 %410 }
 0x120   :  { %v415_v41 = vpop.permute.xlu0 %414 }
 0x121   :  { %463 = vmatpush.bf16.msra.mxu2 %v415_v41 }
 0x125   :  { %464 = vmatpush.bf16.msra.mxu2 %v413_v40  ;;  %2423 = vmatmul.msk.bf16.gmra.mxu1 %vm244_vm1, %v2551_v8 }
 0x129   :  { %465 = vmatpush.bf16.msra.mxu2 %v411_v42 }
 0x12c   :  { %2476 = vmatmul.msk.bf16.vlgmr.msra.gmra.mxu2 %vm244_vm1, %v2925_v43 }
 0x12d   :  { %2579 = vmatpush.lsf.bf16.msrb.mxu2 %v2563_v49 }
 0x131   :  { %2580 = vmatpush.lsf.bf16.msrb.mxu2 %v2562_v50 }
 0x132   :  { %v3066_v18 = vpop.f32.mrf.mxu1 }
 0x133   :  { %4107 = vst [vmem:[#allocation12_spill] sm:$0xff] %v3066_v18 }
 0x135   :  { %2581 = vmatpush.lsf.bf16.msrb.mxu2 %v2970_v51  ;;  %2424 = vmatmul.msk.bf16.gmra.mxu1 %vm244_vm1, %v2552_v11 }
 0x139   :  { %2582 = vmatpush.lsf.bf16.msrb.mxu2 %v2953_v47  ;;  %v2983_v53 = vpop.f32.mrf.mxu2 }
 0x13a   :  { %4103 = vst [vmem:[#allocation8_spill] sm:$0xff] %v2983_v53  ;;  %v3070_v20 = vpop.f32.mrf.mxu1 }
 0x13b   :  { %4108 = vst [vmem:[#allocation13_spill] sm:$0xff] %v3070_v20 }
 0x13c   :  { %2477 = vmatmul.msk.bf16.gmra.mxu2 %vm244_vm1, %v2932_v44 }
 0x13d   :  { %2583 = vmatpush.lsf.bf16.msrb.mxu2 %v2946_v46 }
 0x141   :  { %2584 = vmatpush.lsf.bf16.msrb.mxu2 %v2939_v45  ;;  %v2991_v55 = vpop.f32.mrf.mxu2 }
 0x142   :  { %4104 = vst [vmem:[#allocation9_spill] sm:$0xff] %v2991_v55  ;;  %v3073_v22 = vpop.f32.mrf.mxu1 }
 0x143   :  { %4109 = vst [vmem:[#allocation14_spill] sm:$0xff] %v3073_v22 }
 0x145   :  { %2585 = vmatpush.lsf.bf16.msrb.mxu2 %v2932_v44  ;;  %2425 = vmatmul.msk.bf16.gmra.mxu1 %vm244_vm1, %v2553_v14 }
 0x149   :  { %2586 = vmatpush.lsf.bf16.msrb.mxu2 %v2925_v43  ;;  %v2997_v57 = vpop.f32.mrf.mxu2 }
 0x14a   :  { %4105 = vst [vmem:[#allocation10_spill] sm:$0xff] %v2997_v57  ;;  %v3076_v24 = vpop.f32.mrf.mxu1 }
 0x14b   :  { %4110 = vst [vmem:[#allocation15_spill] sm:$0xff] %v3076_v24 }
 0x14c   :  { %2478 = vmatmul.msk.bf16.gmra.mxu2 %vm244_vm1, %v2939_v45 }
 0x151   :  { %v3000_v58 = vpop.f32.mrf.mxu2 }
 0x152   :  { %4106 = vst [vmem:[#allocation11_spill] sm:$0xff] %v3000_v58  ;;  %v3079_v27 = vpop.f32.mrf.mxu1 }
 0x153   :  { %4111 = vst [vmem:[#allocation16_spill] sm:$0xff] %v3079_v27 }
 0x15a   :  { %v3083_v29 = vpop.f32.mrf.mxu1 }
 0x15b   :  { %4112 = vst [vmem:[#allocation17_spill] sm:$0xff] %v3083_v29 }
 0x15c   :  { %2479 = vmatmul.msk.bf16.gmra.mxu2 %vm244_vm1, %v2946_v46 }
 0x162   :  { %v3086_v31 = vpop.f32.mrf.mxu1 }
 0x163   :  { %4113 = vst [vmem:[#allocation18_spill] sm:$0xff] %v3086_v31 }
 0x16a   :  { %v3089_v33 = vpop.f32.mrf.mxu1 }
 0x16b   :  { %4114 = vst [vmem:[#allocation19_spill] sm:$0xff] %v3089_v33 }
 0x16c   :  { %2480 = vmatmul.msk.bf16.gmra.mxu2 %vm244_vm1, %v2953_v47 }
 0x172   :  { %v3092_v36 = vpop.f32.mrf.mxu1 }
 0x173   :  { %4115 = vst [vmem:[#allocation20_spill] sm:$0xff] %v3092_v36 }
 0x17a   :  { %v3096_v38 = vpop.f32.mrf.mxu1 }
 0x17b   :  { %4116 = vst [vmem:[#allocation21_spill] sm:$0xff] %v3096_v38 }
 0x17c   :  { %2481 = vmatmul.msk.bf16.gmra.mxu2 %vm244_vm1, %v2970_v51 }
 0x182   :  { %v3098_v39 = vpop.f32.mrf.mxu1 }
 0x18a   :  { %v3100_v40 = vpop.f32.mrf.mxu1 }
 0x18c   :  { %2482 = vmatmul.msk.bf16.gmra.mxu2 %vm244_vm1, %v2562_v50 }
 0x192   :  { %v3102_v41 = vpop.f32.mrf.mxu1 }
 0x19a   :  { %v3104_v48 = vpop.f32.mrf.mxu1 }
 0x19b   :  { %2587 = vllmr.8.mxu2 }
 0x19c   :  { %2483 = vmatmul.msk.bf16.gmra.mxu2 %vm244_vm1, %v2563_v49 }
 0x1a2   :  { %v3106_v50 = vpop.f32.mrf.mxu1 }
 0x1ac   :  { %2484 = vmatmul.msk.bf16.gmra.mxu2 %vm244_vm1, %v3005_v59 }
 0x1af   :  { %v467_v61 = vpop.f32.mrf.mxu2 }
 0x1b0   :  { %551 = vrot.lane.b32.xlu2 %v467_v61, %s2827_s25  ;;  %v3108_v61 = vpop.f32.mrf.mxu1 }
 0x1b7   :  { %v469_v62 = vpop.f32.mrf.mxu2 }
 0x1b8   :  { %553 = vrot.lane.b32.xlu2 %v469_v62, %s2827_s25 }
 0x1bc   :  { %2485 = vmatmul.msk.bf16.gmra.mxu2 %vm244_vm1, %v3018_v63 }
 0x1bf   :  { %v472_v1 = vpop.f32.mrf.mxu2 }
 0x1c0   :  { %555 = vrot.lane.b32.xlu0 %v472_v1, %s2827_s25 }
 0x1c7   :  { %v474_v2 = vpop.f32.mrf.mxu2 }
 0x1c8   :  { %557 = vrot.lane.b32.xlu1 %v474_v2, %s2827_s25 }
 0x1cc   :  { %2486 = vmatmul.msk.bf16.gmra.mxu2 %vm244_vm1, %v3031_v3 }
 0x1cf   :  { %v477_v5 = vpop.f32.mrf.mxu2 }
 0x1d0   :  { %559 = vrot.lane.b32.xlu2 %v477_v5, %s2827_s25  ;;  %v3110_v5 = vpop.f32.mrf.mxu1 }
 0x1d1   :  { %4117 = vst [vmem:[#allocation22_spill] sm:$0xff] %v3110_v5 }
 0x1d7   :  { %v479_v6 = vpop.f32.mrf.mxu2 }
 0x1d8   :  { %561 = vrot.lane.b32.xlu0 %v479_v6, %s2827_s25  ;;  %v3113_v11 = vpop.f32.mrf.mxu1 }
 0x1d9   :  { %4118 = vst [vmem:[#allocation23_spill] sm:$0xff] %v3113_v11 }
 0x1dc   :  { %2487 = vmatmul.msk.bf16.gmra.mxu2 %vm244_vm1, %v3044_v7 }
 0x1df   :  { %v482_v9 = vpop.f32.mrf.mxu2 }
 0x1e0   :  { %563 = vrot.lane.b32.xlu1 %v482_v9, %s2827_s25 }
 0x1e7   :  { %v484_v10 = vpop.f32.mrf.mxu2 }
 0x1e8   :  { %565 = vrot.lane.b32.xlu2 %v484_v10, %s2827_s25 }
 0x1ef   :  { %v487_v12 = vpop.f32.mrf.mxu2 }
 0x1f0   :  { %567 = vrot.lane.b32.xlu0 %v487_v12, %s2827_s25 }
 0x1f7   :  { %v489_v13 = vpop.f32.mrf.mxu2 }
 0x1f8   :  { %569 = vrot.lane.b32.xlu1 %v489_v13, %s2827_s25 }
 0x1ff   :  { %v492_v15 = vpop.f32.mrf.mxu2 }
 0x200   :  { %571 = vrot.lane.b32.xlu2 %v492_v15, %s2827_s25 }
 0x207   :  { %v494_v16 = vpop.f32.mrf.mxu2 }
 0x208   :  { %573 = vrot.lane.b32.xlu0 %v494_v16, %s2827_s25 }
 0x20a   :  { %v552_v42 = vpop.permute.xlu2 %551 }
 0x20b   :  { %v623_v10 = vadd.f32 %v552_v42, %v3066_v18 }
 0x20d   :  { %vm647_vm2 = vcmp.gt.f32.partialorder %v623_v10, 0.0 }
 0x20f   :  { %v497_v17 = vpop.f32.mrf.mxu2 }
 0x210   :  { %575 = vrot.lane.b32.xlu1 %v497_v17, %s2827_s25 }
 0x212   :  { %v554_v49 = vpop.permute.xlu2 %553 }
 0x213   :  { %v624_v12 = vadd.f32 %v554_v49, %v3070_v20 }
 0x215   :  { %vm648_vm3 = vcmp.gt.f32.partialorder %v624_v12, 0.0 }
 0x217   :  { %v499_v19 = vpop.f32.mrf.mxu2 }
 0x218   :  { %577 = vrot.lane.b32.xlu2 %v499_v19, %s2827_s25 }
 0x21f   :  { %v502_v21 = vpop.f32.mrf.mxu2 }
 0x220   :  { %579 = vrot.lane.b32.xlu0 %v502_v21, %s2827_s25  ;;  %v671_v21 = vmul.f32 0.2, %v623_v10 }
 0x227   :  { %v504_v23 = vpop.f32.mrf.mxu2 }
 0x228   :  { %581 = vrot.lane.b32.xlu1 %v504_v23, %s2827_s25  ;;  %v672_v23 = vmul.f32 0.2, %v624_v12 }
 0x22a   :  { %v560_v54 = vpop.permute.xlu2 %559 }
 0x22b   :  { %v627_v13 = vadd.f32 %v560_v54, %v3079_v27  ;;  %v3130_v54 = vsel %vm647_vm2, %v623_v10, %v671_v21 }
 0x22d   :  { %vm651_vm4 = vcmp.gt.f32.partialorder %v627_v13, 0.0 }
 0x22f   :  { %v507_v25 = vpop.f32.mrf.mxu2 }
 0x230   :  { %583 = vrot.lane.b32.xlu2 %v507_v25, %s2827_s25  ;;  %v675_v25 = vmul.f32 0.2, %v627_v13 }
 0x232   :  { %v556_v56 = vpop.permute.xlu0 %555 }
 0x233   :  { %v625_v14 = vadd.f32 %v556_v56, %v3073_v22  ;;  %v3133_v56 = vsel %vm648_vm3, %v624_v12, %v672_v23 }
 0x235   :  { %vm649_vm5 = vcmp.gt.f32.partialorder %v625_v14, 0.0 }
 0x237   :  { %v509_v26 = vpop.f32.mrf.mxu2 }
 0x238   :  { %585 = vrot.lane.b32.xlu0 %v509_v26, %s2827_s25  ;;  %v673_v26 = vmul.f32 0.2, %v625_v14 }
 0x23a   :  { %v558_v52 = vpop.permute.xlu1 %557 }
 0x23b   :  { %v626_v15 = vadd.f32 %v558_v52, %v3076_v24 }
 0x23d   :  { %vm650_vm6 = vcmp.gt.f32.partialorder %v626_v15, 0.0 }
 0x23f   :  { %v512_v28 = vpop.f32.mrf.mxu2 }
 0x240   :  { %587 = vrot.lane.b32.xlu1 %v512_v28, %s2827_s25 }
 0x242   :  { %v566_v62 = vpop.permute.xlu2 %565 }
 0x243   :  { %v630_v17 = vadd.f32 %v566_v62, %v3089_v33  ;;  %v3139_v62 = vsel %vm649_vm5, %v625_v14, %v673_v26 }
 0x245   :  { %v678_v42 = vmul.f32 0.2, %v630_v17  ;;  %vm654_vm9 = vcmp.gt.f32.partialorder %v630_v17, 0.0 }
 0x247   :  { %v514_v30 = vpop.f32.mrf.mxu2  ;;  %v3148_v21 = vsel %vm654_vm9, %v630_v17, %v678_v42 }
 0x248   :  { %589 = vrot.lane.b32.xlu2 %v514_v30, %s2827_s25 }
 0x24a   :  { %v562_v0 = vpop.permute.xlu0 %561 }
 0x24b   :  { %v628_v28 = vadd.f32 %v562_v0, %v3083_v29 }
 0x24d   :  { %v676_v0 = vmul.f32 0.2, %v628_v28  ;;  %vm652_vm10 = vcmp.gt.f32.partialorder %v628_v28, 0.0 }
 0x24f   :  { %v517_v32 = vpop.f32.mrf.mxu2  ;;  %v3154_v26 = vsel %vm652_vm10, %v628_v28, %v676_v0 }
 0x250   :  { %591 = vrot.lane.b32.xlu0 %v517_v32, %s2827_s25  ;;  %v726_v47 = vsel %vm719_vm8, %v3154_v26, -inf }
 0x252   :  { %v564_v60 = vpop.permute.xlu1 %563 }
 0x253   :  { %v629_v16 = vadd.f32 %v564_v60, %v3086_v31  ;;  %v3136_v60 = vsel %vm651_vm4, %v627_v13, %v675_v25 }
 0x254   :  { %v724_v42 = vsel %vm719_vm8, %v3136_v60, -inf }
 0x255   :  { %vm653_vm7 = vcmp.gt.f32.partialorder %v629_v16, 0.0 }
 0x257   :  { %v519_v34 = vpop.f32.mrf.mxu2 }
 0x258   :  { %593 = vrot.lane.b32.xlu1 %v519_v34, %s2827_s25  ;;  %v674_v34 = vmul.f32 0.2, %v626_v15 }
 0x25a   :  { %v572_v2 = vpop.permute.xlu2 %571 }
 0x25f   :  { %v522_v35 = vpop.f32.mrf.mxu2 }
 0x260   :  { %595 = vrot.lane.b32.xlu2 %v522_v35, %s2827_s25  ;;  %v677_v35 = vmul.f32 0.2, %v629_v16 }
 0x262   :  { %v568_v4 = vpop.permute.xlu0 %567 }
 0x263   :  { %v631_v49 = vadd.f32 %v568_v4, %v3092_v36  ;;  %v3144_v4 = vsel %vm650_vm6, %v626_v15, %v674_v34  ;;  %v720_v15 = vsel %vm719_vm8, %v3130_v54, -inf }
 0x264   :  { %v3170_v28 = vsel %vm719_vm8, %v3144_v4, -inf }
 0x265   :  { %v679_v12 = vmul.f32 0.2, %v631_v49  ;;  %vm655_vm12 = vcmp.gt.f32.partialorder %v631_v49, 0.0 }
 0x267   :  { %v524_v37 = vpop.f32.mrf.mxu2  ;;  %v3177_v0 = vsel %vm655_vm12, %v631_v49, %v679_v12  ;;  %v725_v12 = vmax.f32 %v720_v15, %v724_v42 }
 0x268   :  { %597 = vrot.lane.b32.xlu0 %v524_v37, %s2827_s25  ;;  %v633_v37 = vadd.f32 %v572_v2, %v3098_v39  ;;  %v3141_v2 = vpop.f32.mrf.mxu1  ;;  %v732_v29 = vsel %vm719_vm8, %v3177_v0, -inf }
 0x269   :  { %4119 = vst [vmem:[#allocation24_spill] sm:$0xff] %v3141_v2 }
 0x26a   :  { %v570_v1 = vpop.permute.xlu1 %569  ;;  %v681_v10 = vmul.f32 0.2, %v633_v37  ;;  %vm657_vm11 = vcmp.gt.f32.partialorder %v633_v37, 0.0 }
 0x26b   :  { %v632_v52 = vadd.f32 %v570_v1, %v3096_v38  ;;  %v3146_v1 = vsel %vm653_vm7, %v629_v16, %v677_v35 }
 0x26c   :  { %v728_v16 = vsel %vm719_vm8, %v3146_v1, -inf  ;;  %v3166_v51 = vsel %vm657_vm11, %v633_v37, %v681_v10 }
 0x26d   :  { %v680_v23 = vmul.f32 0.2, %v632_v52  ;;  %vm656_vm13 = vcmp.gt.f32.partialorder %v632_v52, 0.0  ;;  %v736_v22 = vsel %vm719_vm8, %v3166_v51, -inf }
 0x26f   :  { %v3180_v18 = vsel %vm656_vm13, %v632_v52, %v680_v23 }
 0x270   :  { %v734_v49 = vsel %vm719_vm8, %v3180_v18, -inf  ;;  %v3195_v27 = vpop.f32.mrf.mxu1 }
 0x271   :  { %4120 = vst [vmem:[#allocation25_spill] sm:$0xff] %v3195_v27 }
 0x272   :  { %v578_v8 = vpop.permute.xlu2 %577 }
 0x273   :  { %v636_v14 = vadd.f32 %v578_v8, %v3104_v48  ;;  %v722_v8 = vsel %vm719_vm8, %v3139_v62, -inf }
 0x274   :  { %v729_v20 = vmax.f32 %v722_v8, %v728_v16 }
 0x275   :  { %v684_v37 = vmul.f32 0.2, %v636_v14  ;;  %vm660_vm14 = vcmp.gt.f32.partialorder %v636_v14, 0.0 }
 0x276   :  { %v3197_v31 = vmax.f32 %v729_v20, %v736_v22 }
 0x277   :  { %v3199_v33 = vsel %vm660_vm14, %v636_v14, %v684_v37 }
 0x27a   :  { %v574_v9 = vpop.permute.xlu0 %573 }
 0x27b   :  { %v634_v25 = vadd.f32 %v574_v9, %v3100_v40  ;;  %v721_v9 = vsel %vm719_vm8, %v3133_v56, -inf }
 0x27c   :  { %v727_v23 = vmax.f32 %v721_v9, %v726_v47 }
 0x27d   :  { %v682_v10 = vmul.f32 0.2, %v634_v25  ;;  %vm658_vm15 = vcmp.gt.f32.partialorder %v634_v25, 0.0 }
 0x27e   :  { %v735_v47 = vmax.f32 %v727_v23, %v734_v49 }
 0x27f   :  { %v3201_v36 = vsel %vm658_vm15, %v634_v25, %v682_v10  ;;  %v742_v25 = vsel %vm719_vm8, %v3199_v33, -inf }
 0x282   :  { %v576_v6 = vpop.permute.xlu1 %575 }
 0x283   :  { %v635_v17 = vadd.f32 %v576_v6, %v3102_v41  ;;  %v3174_v6 = vsel %vm719_vm8, %v3148_v21, -inf }
 0x284   :  { %v731_v16 = vmax.f32 %v3170_v28, %v3174_v6 }
 0x285   :  { %v683_v24 = vmul.f32 0.2, %v635_v17  ;;  %vm659_vm0 = vcmp.gt.f32.partialorder %v635_v17, 0.0 }
 0x287   :  { %v3206_v15 = vsel %vm659_vm0, %v635_v17, %v683_v24 }
 0x28a   :  { %v3124_v30 = vpop.permute.xlu2 %583 }
 0x28b   :  { %v639_v42 = vadd.f32 %v3124_v30, %v3110_v5  ;;  %v2828_v5 = vmov 32  }
 0x28c   :  { %2621 = vset.pattern.permute.xlu0 %v2828_v5  ;;  %2620 = vset.pattern.permute.xlu2 %v2828_v5 }
 0x28d   :  { %vm663_vm4 = vcmp.gt.f32.partialorder %v639_v42, 0.0  ;;  %2619 = vset.pattern.permute.xlu1 %v2828_v5 }
 0x292   :  { %v580_v32 = vpop.permute.xlu0 %579 }
 0x293   :  { %v637_v52 = vadd.f32 %v580_v32, %v3106_v50  ;;  %v3204_v32 = vmax.f32 %v725_v12, %v732_v29  ;;  %v738_v29 = vsel %vm719_vm8, %v3201_v36, -inf }
 0x295   :  { %v685_v28 = vmul.f32 0.2, %v637_v52  ;;  %vm661_vm2 = vcmp.gt.f32.partialorder %v637_v52, 0.0 }
 0x29a   :  { %v3121_v19 = vpop.permute.xlu1 %581 }
 0x29b   :  { %v638_v8 = vadd.f32 %v3121_v19, %v3108_v61 }
 0x29d   :  { %v686_v24 = vmul.f32 0.2, %v638_v8  ;;  %vm662_vm3 = vcmp.gt.f32.partialorder %v638_v8, 0.0 }
 0x29f   :  { %v3223_v49 = vsel %vm662_vm3, %v638_v8, %v686_v24 }
 0x2a2   :  { %v590_v34 = vpop.permute.xlu2 %589 }
 0x2a3   :  { %v642_v20 = vadd.f32 %v590_v34, %v3195_v27  ;;  %v740_v34 = vsel %vm719_vm8, %v3206_v15, -inf }
 0x2a5   :  { %v690_v6 = vmul.f32 0.2, %v642_v20  ;;  %vm666_vm6 = vcmp.gt.f32.partialorder %v642_v20, 0.0 }
 0x2a7   :  { %v3231_v8 = vsel %vm666_vm6, %v642_v20, %v690_v6  ;;  %vm1801_vm6 = vcmask 1040368  }
 0x2aa   :  { %v586_v35 = vpop.permute.xlu0 %585 }
 0x2ab   :  { %v640_v38 = vadd.f32 %v586_v35, %v3113_v11  ;;  %v743_v11 = vmax.f32 %v735_v47, %v742_v25  ;;  %v746_v47 = vsel %vm719_vm8, %v3223_v49, -inf }
 0x2ad   :  { %v688_v17 = vmul.f32 0.2, %v640_v38  ;;  %vm664_vm5 = vcmp.gt.f32.partialorder %v640_v38, 0.0 }
 0x2af   :  { %v3225_v12 = vsel %vm664_vm5, %v640_v38, %v688_v17  ;;  %v739_v38 = vmax.f32 %v731_v16, %v738_v29 }
 0x2b0   :  { %v750_v25 = vsel %vm719_vm8, %v3225_v12, -inf }
 0x2b1   :  { %v751_v6 = vmax.f32 %v743_v11, %v750_v25 }
 0x2b2   :  { %v588_v13 = vpop.permute.xlu1 %587 }
 0x2b3   :  { %v641_v22 = vadd.f32 %v588_v13, %v3141_v2  ;;  %v687_v13 = vmul.f32 0.2, %v639_v42 }
 0x2b5   :  { %v689_v37 = vmul.f32 0.2, %v641_v22  ;;  %vm665_vm7 = vcmp.gt.f32.partialorder %v641_v22, 0.0 }
 0x2ba   :  { %v596_v19 = vpop.permute.xlu2 %595 }
 0x2bb   :  { %v645_v30 = vadd.f32 %v596_v19, %v2997_v57 }
 0x2bd   :  { %v693_v23 = vmul.f32 0.2, %v645_v30  ;;  %vm669_vm10 = vcmp.gt.f32.partialorder %v645_v30, 0.0 }
 0x2bf   :  { %v3245_v20 = vsel %vm669_vm10, %v645_v30, %v693_v23 }
 0x2c2   :  { %v592_v9 = vpop.permute.xlu0 %591 }
 0x2c3   :  { %v643_v35 = vadd.f32 %v592_v9, %v2983_v53  ;;  %v3227_v9 = vsel %vm663_vm4, %v639_v42, %v687_v13  ;;  %v741_v42 = vmax.f32 %v3204_v32, %v740_v34  ;;  %v754_v32 = vsel %vm719_vm8, %v3231_v8, -inf }
 0x2c4   :  { %v748_v13 = vsel %vm719_vm8, %v3227_v9, -inf  ;;  %v747_v34 = vmax.f32 %v739_v38, %v746_v47 }
 0x2c5   :  { %v691_v19 = vmul.f32 0.2, %v643_v35  ;;  %vm667_vm11 = vcmp.gt.f32.partialorder %v643_v35, 0.0 }
 0x2ca   :  { %v594_v46 = vpop.permute.xlu1 %593 }
 0x2cb   :  { %v644_v14 = vadd.f32 %v594_v46, %v2991_v55  ;;  %v3221_v46 = vsel %vm661_vm2, %v637_v52, %v685_v28  ;;  %v3233_v28 = vsel %vm665_vm7, %v641_v22, %v689_v37  ;;  %v3248_v22 = vsel %vm667_vm11, %v643_v35, %v691_v19 }
 0x2cc   :  { %v744_v52 = vsel %vm719_vm8, %v3221_v46, -inf  ;;  %v749_v37 = vmax.f32 %v741_v42, %v748_v13  ;;  %v760_v35 = vsel %vm719_vm8, %v3245_v20, -inf }
 0x2cd   :  { %v692_v10 = vmul.f32 0.2, %v644_v14  ;;  %vm668_vm9 = vcmp.gt.f32.partialorder %v644_v14, 0.0  ;;  %v745_v16 = vmax.f32 %v3197_v31, %v744_v52  ;;  %v756_v31 = vsel %vm719_vm8, %v3248_v22, -inf }
 0x2ce   :  { %v755_v52 = vmax.f32 %v747_v34, %v754_v32  ;;  %v757_v27 = vmax.f32 %v749_v37, %v756_v31 }
 0x2cf   :  { %v3235_v24 = vsel %vm668_vm9, %v644_v14, %v692_v10  ;;  %v752_v14 = vsel %vm719_vm8, %v3233_v28, -inf }
 0x2d0   :  { %v758_v29 = vsel %vm719_vm8, %v3235_v24, -inf  ;;  %v753_v10 = vmax.f32 %v745_v16, %v752_v14 }
 0x2d1   :  { %v759_v23 = vmax.f32 %v751_v6, %v758_v29 }
 0x2d2   :  { %v761_v2 = vmax.f32 %v753_v10, %v760_v35 }
 0x2d3   :  { %v764_v38 = vmax.f32 %v757_v27, %v759_v23 }
 0x2da   :  { %v598_v17 = vpop.permute.xlu0 %597 }
 0x2db   :  { %v646_v5 = vadd.f32 %v598_v17, %v3000_v58 }
 0x2dd   :  { %vm670_vm12 = vcmp.gt.f32.partialorder %v646_v5, 0.0  ;;  %v694_v30 = vmul.f32 0.2, %v646_v5 }
 0x2df   :  { %v718_v19 = vsel %vm670_vm12, %v646_v5, %v694_v30 }
 0x2e0   :  { %v762_v17 = vsel %vm719_vm8, %v718_v19, -inf  ;;  %vm1361_vm8 = vcmask 261120  }
 0x2e1   :  { %v763_v55 = vmax.f32 %v755_v52, %v762_v17 }
 0x2e3   :  { %v765_v11 = vmax.f32 %v761_v2, %v763_v55 }
 0x2e5   :  { %v766_v47 = vmax.f32 %v764_v38, %v765_v11 }
 0x2e7   :  { %v767_v25 = vrot.slane %v766_v47, 4 }
 0x2e9   :  { %v768_v42 = vmax.f32 %v766_v47, %v767_v25 }
 0x2eb   :  { %v769_v13 = vrot.slane %v768_v42, 2 }
 0x2ed   :  { %v770_v53 = vmax.f32 %v768_v42, %v769_v13 }
 0x2ef   :  { %v771_v58 = vrot.slane %v770_v53, 1 }
 0x2f1   :  { %v3263_v57 = vmax.f32 %v770_v53, %v771_v58 }
 0x2f3   :  { %v796_v16 = vsub.f32 %v718_v19, %v3263_v57  ;;  %v788_v5 = vsub.f32 %v3223_v49, %v3263_v57  ;;  %v787_v32 = vsub.f32 %v3221_v46, %v3263_v57  ;;  %v785_v27 = vsub.f32 %v3206_v15, %v3263_v57 }
 0x2f4   :  { %v786_v55 = vsub.f32 %v3199_v33, %v3263_v57  ;;  %v783_v2 = vsub.f32 %v3166_v51, %v3263_v57  ;;  %v782_v29 = vsub.f32 %v3180_v18, %v3263_v57  ;;  %v784_v49 = vsub.f32 %v3201_v36, %v3263_v57 }
 0x2f5   :  { %v843_v14 = vmul.f32 1.442695, %v796_v16  ;;  %v827_v53 = vmul.f32 1.442695, %v788_v5  ;;  %v825_v58 = vmul.f32 1.442695, %v787_v32  ;;  %v781_v15 = vsub.f32 %v3177_v0, %v3263_v57 }
 0x2f6   :  { %v821_v34 = vmul.f32 1.442695, %v785_v27  ;;  %v823_v46 = vmul.f32 1.442695, %v786_v55  ;;  %v817_v33 = vmul.f32 1.442695, %v783_v2  ;;  %v777_v51 = vsub.f32 %v3136_v60, %v3263_v57 }
 0x2f7   :  { %2632 = vpow2.f32 %v843_v14  ;;  %v815_v6 = vmul.f32 1.442695, %v782_v29  ;;  %v780_v30 = vsub.f32 %v3148_v21, %v3263_v57  ;;  %v819_v18 = vmul.f32 1.442695, %v784_v49 }
 0x2f8   :  { %2634 = vpow2.f32 %v827_v53  ;;  %v779_v36 = vsub.f32 %v3146_v1, %v3263_v57  ;;  %v813_v37 = vmul.f32 1.442695, %v781_v15  ;;  %v795_v0 = vsub.f32 %v3245_v20, %v3263_v57 }
 0x2f9   :  { %2636 = vpow2.f32 %v825_v58  ;;  %v805_v35 = vmul.f32 1.442695, %v777_v51  ;;  %v778_v60 = vsub.f32 %v3154_v26, %v3263_v57  ;;  %v811_v10 = vmul.f32 1.442695, %v780_v30 }
 0x2fa   :  { %2638 = vpow2.f32 %v821_v34  ;;  %v793_v21 = vsub.f32 %v3248_v22, %v3263_v57  ;;  %v809_v1 = vmul.f32 1.442695, %v779_v36  ;;  %v776_v19 = vsub.f32 %v3144_v4, %v3263_v57 }
 0x2fb   :  { %2640 = vpow2.f32 %v823_v46  ;;  %v841_v26 = vmul.f32 1.442695, %v795_v0  ;;  %v775_v52 = vsub.f32 %v3139_v62, %v3263_v57  ;;  %v807_v22 = vmul.f32 1.442695, %v778_v60 }
 0x2fc   :  { %2642 = vpow2.f32 %v817_v33  ;;  %v774_v38 = vsub.f32 %v3133_v56, %v3263_v57  ;;  %v837_v4 = vmul.f32 1.442695, %v793_v21  ;;  %v794_v47 = vsub.f32 %v3235_v24, %v3263_v57 }
 0x2fd   :  { %v3292_v31 = vpop.eup %2632  ;;  %2644 = vpow2.f32 %v815_v6  ;;  %v803_v42 = vmul.f32 1.442695, %v776_v19  ;;  %v789_v13 = vsub.f32 %v3227_v9, %v3263_v57  ;;  %v801_v5 = vmul.f32 1.442695, %v775_v52 }
 0x2fe   :  { %v3296_v23 = vpop.eup %2634  ;;  %2646 = vpow2.f32 %v819_v18  ;;  %v773_v24 = vsub.f32 %v3130_v54, %v3263_v57  ;;  %v799_v27 = vmul.f32 1.442695, %v774_v38  ;;  %v791_v55 = vsub.f32 %v3233_v28, %v3263_v57 }
 0x2ff   :  { %v3300_v20 = vpop.eup %2636  ;;  %922 = vperm.xlu2 %2620, %v3296_v23   ;;  %2648 = vpow2.f32 %v813_v37  ;;  %v839_v9 = vmul.f32 1.442695, %v794_v47  ;;  %v792_v14 = vsub.f32 %v3231_v8, %v3263_v57  ;;  %v829_v54 = vmul.f32 1.442695, %v789_v13 }
 0x300   :  { %v3305_v17 = vpop.eup %2638  ;;  %917 = vperm.xlu1 %2619, %v3300_v20   ;;  %2650 = vpow2.f32 %v805_v35  ;;  %v1122_v62 = vpack.c.bf16 %v3296_v23, %v3300_v20  ;;  %v790_v29 = vsub.f32 %v3225_v12, %v3263_v57  ;;  %v797_v49 = vmul.f32 1.442695, %v773_v24 }
 0x301   :  { %v3310_v11 = vpop.eup %2640  ;;  %907 = vperm.xlu0 %2621, %v3305_v17   ;;  %2652 = vpow2.f32 %v811_v10  ;;  %v833_v46 = vmul.f32 1.442695, %v791_v55  ;;  %v835_v57 = vmul.f32 1.442695, %v792_v14 }
 0x302   :  { %v3317_v25 = vpop.eup %2642  ;;  %2654 = vpow2.f32 %v809_v1  ;;  %v1121_v56 = vpack.c.bf16 %v3310_v11, %v3305_v17  ;;  %v831_v51 = vmul.f32 1.442695, %v790_v29 }
 0x303   :  { %v3323_v16 = vpop.eup %2644  ;;  %2656 = vpow2.f32 %v841_v26 }
 0x304   :  { %v3327_v32 = vpop.eup %2646  ;;  %2658 = vpow2.f32 %v807_v22 }
 0x305   :  { %v3331_v2 = vpop.eup %2648  ;;  %2660 = vpow2.f32 %v837_v4  ;;  %v1120_v53 = vpack.c.bf16 %v3327_v32, %v3317_v25 }
 0x306   :  { %v3337_v58 = vpop.eup %2650  ;;  %2662 = vpow2.f32 %v803_v42  ;;  %v1119_v28 = vpack.c.bf16 %v3323_v16, %v3331_v2 }
 0x307   :  { %v3343_v34 = vpop.eup %2652  ;;  %897 = vperm.xlu2 %2620, %v3317_v25   ;;  %2664 = vpow2.f32 %v801_v5 }
 0x308   :  { %v2655_v8 = vpop.eup %2654  ;;  %912 = vperm.xlu1 %2619, %v3310_v11   ;;  %2666 = vpow2.f32 %v799_v27 }
 0x309   :  { %v3347_v15 = vpop.eup %2656  ;;  %892 = vperm.xlu0 %2621, %v3323_v16   ;;  %2668 = vpow2.f32 %v839_v9  ;;  %v1118_v12 = vpack.c.bf16 %v3343_v34, %v2655_v8  ;;  %v4121_v16 = vld [vmem:[#allocation21_spill] sm:$0xff] }
 0x30a   :  { %v2659_v33 = vpop.eup %2658  ;;  %2670 = vpow2.f32 %v829_v54  ;;  %v1126_v6 = vpack.c.bf16 %v3292_v31, %v3347_v15  ;;  %v4127_v54 = vld [vmem:[#allocation5_spill] sm:$0xff] }
 0x30b   :  { %v3353_v30 = vpop.eup %2660  ;;  %2672 = vpow2.f32 %v797_v49  ;;  %v1117_v18 = vpack.c.bf16 %v2659_v33, %v3337_v58 }
 0x30c   :  { %v3356_v36 = vpop.eup %2662  ;;  %2674 = vpow2.f32 %v833_v46 }
 0x30d   :  { %v3358_v37 = vpop.eup %2664  ;;  %2676 = vpow2.f32 %v835_v57 }
 0x30e   :  { %v3360_v0 = vpop.eup %2666  ;;  %2678 = vpow2.f32 %v831_v51  ;;  %v1116_v35 = vpack.c.bf16 %v3356_v36, %v3358_v37 }
 0x30f   :  { %v3364_v60 = vpop.eup %2668  ;;  %887 = vperm.xlu2 %2620, %v3331_v2  }
 0x310   :  { %v3367_v10 = vpop.eup %2670  ;;  %902 = vperm.xlu1 %2619, %v3327_v32   ;;  %v1125_v21 = vpack.c.bf16 %v3364_v60, %v3353_v30 }
 0x311   :  { %v3372_v1 = vpop.eup %2672  ;;  %867 = vperm.xlu0 %2621, %v3337_v58  }
 0x312   :  { %v3375_v19 = vpop.eup %2674  ;;  %v1115_v26 = vpack.c.bf16 %v3360_v0, %v3372_v1 }
 0x313   :  { %v3379_v52 = vpop.eup %2676 }
 0x314   :  { %v3381_v22 = vpop.eup %2678  ;;  %v1124_v38 = vpack.c.bf16 %v3379_v52, %v3375_v19 }
 0x315   :  { %v1123_v4 = vpack.c.bf16 %v3381_v22, %v3367_v10 }
 0x317   :  { %882 = vperm.xlu2 %2620, %v3343_v34  }
 0x318   :  { %877 = vperm.xlu1 %2619, %v2655_v8   ;;  %v4128_v8 = vld [vmem:[#allocation16_spill] sm:$0xff] }
 0x319   :  { %962 = vperm.xlu0 %2621, %v3292_v31  }
 0x31f   :  { %957 = vperm.xlu2 %2620, %v3347_v15   ;;  %v4129_v15 = vld [vmem:[#allocation17_spill] sm:$0xff] }
 0x320   :  { %872 = vperm.xlu1 %2619, %v2659_v33  }
 0x321   :  { %947 = vperm.xlu0 %2621, %v3353_v30  }
 0x327   :  { %862 = vperm.xlu2 %2620, %v3356_v36  }
 0x328   :  { %857 = vperm.xlu1 %2619, %v3358_v37  }
 0x329   :  { %852 = vperm.xlu0 %2621, %v3360_v0  }
 0x32f   :  { %847 = vperm.xlu2 %2620, %v3372_v1  }
 0x330   :  { %952 = vperm.xlu1 %2619, %v3364_v60  }
 0x331   :  { %927 = vperm.xlu0 %2621, %v3367_v10  }
 0x337   :  { %942 = vperm.xlu2 %2620, %v3379_v52   ;;  %v4136_v52 = vld [vmem:[#allocation9_spill] sm:$0xff] }
 0x338   :  { %937 = vperm.xlu1 %2619, %v3375_v19  }
 0x340   :  { %932 = vperm.xlu1 %2619, %v3381_v22  }
 0x348   :  { %1153 = vrot.lane.b32.xlu1 %v1122_v62, %s2829_s0 }
 0x350   :  { %1151 = vrot.lane.b32.xlu1 %v1121_v56, %s2829_s0 }
 0x353   :  { %1029 = vxpose.xlu0.c.b16.start [1/4] (short) (narrow) %v3005_v59, 64 }
 0x358   :  { %1149 = vrot.lane.b32.xlu1 %v1120_v53, %s2829_s0  ;;  %v4126_v53 = vld [vmem:[#allocation11_spill] sm:$0xff] }
 0x359   :  { %v923_v31 = vpop.permute.xlu2 %922 }
 0x35a   :  { %v980_v20 = vmul.f32 %v923_v31, %v3108_v61 }
 0x35d   :  { %1013 = vxpose.xlu2.c.b16.start [1/8] (narrow) %v2925_v43, 64 }
 0x360   :  { %1147 = vrot.lane.b32.xlu1 %v1119_v28, %s2829_s0 }
 0x361   :  { %v898_v23 = vpop.permute.xlu2 %897 }
 0x363   :  { %1030 = vxpose.xlu0.c.b16.cont [2/4] (short) (narrow) %v3018_v63, 64 }
 0x368   :  { %1145 = vrot.lane.b32.xlu1 %v1118_v12, %s2829_s0 }
 0x369   :  { %v888_v43 = vpop.permute.xlu2 %887 }
 0x36d   :  { %1014 = vxpose.xlu2.c.b16.cont [2/8] (narrow) %v2932_v44, 64 }
 0x370   :  { %1143 = vrot.lane.b32.xlu1 %v1117_v18, %s2829_s0  ;;  %v4131_v18 = vld [vmem:[#allocation14_spill] sm:$0xff] }
 0x371   :  { %v883_v61 = vpop.permute.xlu2 %882 }
 0x372   :  { %v918_v59 = vpop.permute.xlu1 %917 }
 0x373   :  { %v979_v17 = vmul.f32 %v918_v59, %v3106_v50  ;;  %v908_v11 = vpop.permute.xlu0 %907  ;;  %1031 = vxpose.xlu0.c.b16.cont [3/4] (short) (narrow) %v3031_v3, 64  ;;  %v975_v3 = vmul.f32 %v898_v23, %v3098_v39  ;;  %v4123_v39 = vld [vmem:[#allocation19_spill] sm:$0xff] }
 0x374   :  { %v977_v62 = vmul.f32 %v908_v11, %v3102_v41  ;;  %v972_v55 = vmul.f32 %v883_v61, %v4123_v39 }
 0x375   :  { %v996_v47 = vpack.c.bf16 %v980_v20, %v979_v17  ;;  %v4135_v20 = vld [vmem:[#allocation8_spill] sm:$0xff] }
 0x377   :  { %1057 = vmatpush.bf16.msrb.mxu3 %v996_v47  ;;  %v4137_v47 = vld [vmem:[#allocation25_spill] sm:$0xff] }
 0x378   :  { %1161 = vrot.lane.b32.xlu1 %v1126_v6, %s2829_s0  ;;  %v4130_v6 = vld [vmem:[#allocation15_spill] sm:$0xff] }
 0x37a   :  { %v913_v63 = vpop.permute.xlu1 %912 }
 0x37b   :  { %v978_v44 = vmul.f32 %v913_v63, %v3104_v48  ;;  %v893_v25 = vpop.permute.xlu0 %892  ;;  %v4122_v48 = vld [vmem:[#allocation20_spill] sm:$0xff] }
 0x37c   :  { %v974_v41 = vmul.f32 %v893_v25, %v4121_v16  ;;  %v973_v24 = vmul.f32 %v888_v43, %v4122_v48  ;;  %v4139_v25 = vld [vmem:[#allocation7_spill] sm:$0xff] }
 0x37d   :  { %1015 = vxpose.xlu2.c.b16.cont [3/8] (narrow) %v2939_v45, 64  ;;  %v995_v42 = vpack.c.bf16 %v978_v44, %v977_v62  ;;  %v958_v45 = vpop.permute.xlu2 %957  ;;  %v4138_v62 = vld [vmem:[#allocation24_spill] sm:$0xff]  ;;  %v3466_v48 = vld [vmem:[%s4052_s2 + $0x30] sm:$0xff] }
 0x37e   :  { %v993_v32 = vpack.c.bf16 %v974_v41, %v973_v24 }
 0x37f   :  { %1058 = vmatpush.bf16.msrb.mxu3 %v995_v42 }
 0x380   :  { %1141 = vrot.lane.b32.xlu1 %v1116_v35, %s2829_s0  ;;  %v4132_v35 = vld [vmem:[#allocation13_spill] sm:$0xff] }
 0x382   :  { %v903_v50 = vpop.permute.xlu1 %902 }
 0x383   :  { %v976_v13 = vmul.f32 %v903_v50, %v3100_v40  ;;  %v868_v56 = vpop.permute.xlu0 %867  ;;  %1032 = vxpose.xlu0.c.b16.end [4/4] (short) (narrow) %v3044_v7, 64  ;;  %v4124_v40 = vld [vmem:[#allocation18_spill] sm:$0xff] }
 0x384   :  { %v4125_v7 = vld [vmem:[#allocation10_spill] sm:$0xff]  ;;  %v969_v46 = vmul.f32 %v868_v56, %v4128_v8  ;;  %v4141_v56 = vld [vmem:[#allocation23_spill] sm:$0xff] }
 0x385   :  { %v994_v5 = vpack.c.bf16 %v976_v13, %v975_v3  ;;  %v987_v14 = vmul.f32 %v958_v45, %v4125_v7  ;;  %v863_v34 = vpop.permute.xlu2 %862  ;;  %v4140_v3 = vld [vmem:[#allocation22_spill] sm:$0xff] }
 0x386   :  { %v968_v30 = vmul.f32 %v863_v34, %v4130_v6 }
 0x387   :  { %1059 = vmatpush.bf16.msrb.mxu3 %v994_v5 }
 0x388   :  { %1159 = vrot.lane.b32.xlu1 %v1125_v21, %s2829_s0  ;;  %v4133_v21 = vld [vmem:[#allocation6_spill] sm:$0xff] }
 0x38a   :  { %v878_v27 = vpop.permute.xlu1 %877 }
 0x38b   :  { %v971_v2 = vmul.f32 %v878_v27, %v4124_v40  ;;  %v963_v9 = vpop.permute.xlu0 %962  ;;  %1060 = vmatpush.bf16.msrb.mxu3 %v993_v32  ;;  %v3472_v32 = vld [vmem:[%s4052_s2 + $0x38] sm:$0xff] }
 0x38c   :  { %v988_v58 = vmul.f32 %v963_v9, %v4126_v53 }
 0x38d   :  { %1016 = vxpose.xlu2.c.b16.cont [4/8] (narrow) %v4127_v54, 64  ;;  %v992_v29 = vpack.c.bf16 %v972_v55, %v971_v2  ;;  %v848_v0 = vpop.permute.xlu2 %847 }
 0x38e   :  { %v1000_v28 = vpack.c.bf16 %v988_v58, %v987_v14 }
 0x38f   :  { %1061 = vmatpush.bf16.msrb.mxu3 %v992_v29 }
 0x390   :  { %1090 = vmatpush.bf16.msrb.mxu0 %v1000_v28  ;;  %1139 = vrot.lane.b32.xlu1 %v1115_v26, %s2829_s0  ;;  %v4134_v26 = vld [vmem:[#allocation12_spill] sm:$0xff] }
 0x391   :  { %v965_v31 = vmul.f32 %v848_v0, %v4134_v26 }
 0x392   :  { %v873_v49 = vpop.permute.xlu1 %872 }
 0x393   :  { %v970_v57 = vmul.f32 %v873_v49, %v4129_v15  ;;  %v948_v12 = vpop.permute.xlu0 %947 }
 0x394   :  { %v985_v19 = vmul.f32 %v948_v12, %v4135_v20 }
 0x395   :  { %v991_v33 = vpack.c.bf16 %v970_v57, %v969_v46  ;;  %v943_v11 = vpop.permute.xlu2 %942 }
 0x396   :  { %v984_v63 = vmul.f32 %v943_v11, %v4137_v47 }
 0x397   :  { %1062 = vmatpush.bf16.msrb.mxu3 %v991_v33 }
 0x398   :  { %1157 = vrot.lane.b32.xlu1 %v1124_v38, %s2829_s0 }
 0x39a   :  { %v858_v51 = vpop.permute.xlu1 %857 }
 0x39b   :  { %v967_v36 = vmul.f32 %v858_v51, %v4131_v18  ;;  %v853_v37 = vpop.permute.xlu0 %852 }
 0x39c   :  { %v966_v60 = vmul.f32 %v853_v37, %v4132_v35 }
 0x39d   :  { %1017 = vxpose.xlu2.c.b16.cont [5/8] (narrow) %v4133_v21, 64  ;;  %v990_v1 = vpack.c.bf16 %v968_v30, %v967_v36 }
 0x39e   :  { %v989_v23 = vpack.c.bf16 %v966_v60, %v965_v31  ;;  %v4079_v31 = vmov 0  }
 0x39f   :  { %1063 = vmatpush.bf16.msrb.mxu3 %v990_v1  ;;  %2622 = vset.pattern.permute.xlu1 %v4079_v31 }
 0x3a2   :  { %v953_v59 = vpop.permute.xlu1 %952 }
 0x3a3   :  { %v986_v38 = vmul.f32 %v953_v59, %v4136_v52  ;;  %1064 = vmatpush.bf16.msrb.mxu3 %v989_v23  ;;  %v928_v61 = vpop.permute.xlu0 %927 }
 0x3a4   :  { %v981_v13 = vmul.f32 %v928_v61, %v4140_v3 }
 0x3a5   :  { %v999_v17 = vpack.c.bf16 %v986_v38, %v985_v19 }
 0x3a7   :  { %1091 = vmatpush.bf16.msrb.mxu0 %v999_v17 }
 0x3aa   :  { %v938_v43 = vpop.permute.xlu1 %937 }
 0x3ab   :  { %v983_v44 = vmul.f32 %v938_v43, %v4138_v62 }
 0x3ad   :  { %1018 = vxpose.xlu2.c.b16.cont [6/8] (narrow) %v4139_v25, 64  ;;  %v998_v42 = vpack.c.bf16 %v984_v63, %v983_v44 }
 0x3af   :  { %1092 = vmatpush.bf16.msrb.mxu0 %v998_v42 }
 0x3b2   :  { %v933_v50 = vpop.permute.xlu1 %932 }
 0x3b3   :  { %v982_v16 = vmul.f32 %v933_v50, %v4141_v56 }
 0x3b5   :  { %v997_v41 = vpack.c.bf16 %v982_v16, %v981_v13 }
 0x3b7   :  { %1093 = vmatpush.bf16.msrb.mxu0 %v997_v41 }
 0x3ba   :  { %v1154_v5 = vpop.permute.xlu1 %1153 }
 0x3bb   :  { %1175 = vmatpush.bf16.msra.mxu3 %v1154_v5 }
 0x3bd   :  { %1019 = vxpose.xlu2.c.b16.cont [7/8] (narrow) %v3466_v48, 64 }
 0x3c2   :  { %v1152_v24 = vpop.permute.xlu1 %1151 }
 0x3c3   :  { %1176 = vmatpush.bf16.msra.mxu3 %v1152_v24 }
 0x3ca   :  { %v1150_v45 = vpop.permute.xlu1 %1149 }
 0x3cb   :  { %1177 = vmatpush.bf16.msra.mxu3 %v1150_v45 }
 0x3cd   :  { %1020 = vxpose.xlu2.c.b16.end [8/8] (narrow) %v3472_v32, 64 }
 0x3d2   :  { %v1148_v27 = vpop.permute.xlu1 %1147 }
 0x3d3   :  { %1178 = vmatpush.bf16.msra.mxu3 %v1148_v27 }
 0x3da   :  { %v1146_v39 = vpop.permute.xlu1 %1145 }
 0x3db   :  { %1179 = vmatpush.bf16.msra.mxu3 %v1146_v39 }
 0x3e2   :  { %v1144_v55 = vpop.permute.xlu1 %1143 }
 0x3e3   :  { %1180 = vmatpush.bf16.msra.mxu3 %v1144_v55 }
 0x3ea   :  { %v1162_v40 = vpop.permute.xlu1 %1161 }
 0x3eb   :  { %1208 = vmatpush.bf16.msra.mxu0 %v1162_v40 }
 0x3f1   :  { %1155 = vrot.lane.b32.xlu0 %v1123_v4, %s2829_s0 }
 0x3f2   :  { %v1142_v2 = vpop.permute.xlu1 %1141 }
 0x3f3   :  { %1181 = vmatpush.bf16.msra.mxu3 %v1142_v2 }
 0x3fa   :  { %v1160_v9 = vpop.permute.xlu1 %1159 }
 0x3fb   :  { %1209 = vmatpush.bf16.msra.mxu0 %v1160_v9 }
 0x3fe   :  { %v1021_v7 = vpop.trf.xlu2 }
 0x3ff   :  { %1065 = vmatmul.bf16.vlgmr.msrb.gmra.mxu3 %v1021_v7  ;;  %v3479_v14 = vpop.trf.xlu0 }
 0x400   :  { %4142 = vst [vmem:[#allocation21_spill] sm:$0xff] %v3479_v14  ;;  %2488 = vmatmul.msk.bf16.vlgmr.msrb.gmra.mxu0 %vm244_vm1, %v3479_v14 }
 0x402   :  { %v1140_v53 = vpop.permute.xlu1 %1139 }
 0x403   :  { %1182 = vmatpush.bf16.msra.mxu3 %v1140_v53 }
 0x40a   :  { %v1158_v58 = vpop.permute.xlu1 %1157 }
 0x40b   :  { %1210 = vmatpush.bf16.msra.mxu0 %v1158_v58 }
 0x40e   :  { %v1022_v54 = vpop.trf.xlu2 }
 0x40f   :  { %1070 = vmatmul.bf16.gmra.mxu3 %v1022_v54  ;;  %v3483_v29 = vpop.trf.xlu0 }
 0x410   :  { %4143 = vst [vmem:[#allocation20_spill] sm:$0xff] %v3483_v29  ;;  %2489 = vmatmul.msk.bf16.gmra.mxu0 %vm244_vm1, %v3483_v29 }
 0x41e   :  { %v1023_v10 = vpop.trf.xlu2 }
 0x41f   :  { %1075 = vmatmul.bf16.gmra.mxu3 %v1023_v10  ;;  %v3487_v22 = vpop.trf.xlu0 }
 0x420   :  { %4144 = vst [vmem:[#allocation19_spill] sm:$0xff] %v3487_v22  ;;  %2490 = vmatmul.msk.bf16.gmra.mxu0 %vm244_vm1, %v3487_v22 }
 0x42e   :  { %v1024_v4 = vpop.trf.xlu2 }
 0x42f   :  { %1080 = vmatmul.bf16.gmra.mxu3 %v1024_v4  ;;  %v3491_v28 = vpop.trf.xlu0  ;;  %2623 = vset.pattern.permute.xlu2 %v4079_v31 }
 0x430   :  { %4145 = vst [vmem:[#allocation18_spill] sm:$0xff] %v3491_v28  ;;  %2491 = vmatmul.msk.bf16.gmra.mxu0 %vm244_vm1, %v3491_v28 }
 0x43f   :  { %1183 = vmatmul.bf16.vlgmr.msra.gmra.mxu3 %v1021_v7 }
 0x44f   :  { %1188 = vmatmul.bf16.gmra.mxu3 %v1022_v54 }
 0x45f   :  { %1193 = vmatmul.bf16.gmra.mxu3 %v1023_v10 }
 0x463   :  { %v1156_v34 = vpop.permute.xlu0 %1155 }
 0x464   :  { %1211 = vmatpush.bf16.msra.mxu0 %v1156_v34 }
 0x467   :  { %2492 = vmatmul.msk.bf16.vlgmr.msra.gmra.mxu0 %vm244_vm1, %v3479_v14 }
 0x46f   :  { %1198 = vmatmul.bf16.gmra.mxu3 %v1024_v4 }
 0x477   :  { %2493 = vmatmul.msk.bf16.gmra.mxu0 %vm244_vm1, %v3483_v29 }
 0x47d   :  { %v1095_v49 = vpop.f32.mrf.mxu0 }
 0x482   :  { %v1066_v8 = vpop.f32.mrf.mxu3 }
 0x483   :  { %v3499_v46 = vadd.f32 %v1095_v49, %v1066_v8 }
 0x485   :  { %v3501_v15 = vpop.f32.mrf.mxu0 }
 0x487   :  { %2494 = vmatmul.msk.bf16.gmra.mxu0 %vm244_vm1, %v3487_v22 }
 0x48a   :  { %v3505_v57 = vpop.f32.mrf.mxu3 }
 0x48d   :  { %v1100_v12 = vpop.f32.mrf.mxu0 }
 0x492   :  { %v1071_v33 = vpop.f32.mrf.mxu3 }
 0x493   :  { %v3507_v51 = vadd.f32 %v1100_v12, %v1071_v33  ;;  %v1359_v33 = vld [vmem:[%s4055_s5 + $0x18] sm:$0xff] }
 0x494   :  { %1398 = vmatpush.msrb.mxu3 %v1359_v33 }
 0x495   :  { %v3509_v6 = vpop.f32.mrf.mxu0 }
 0x497   :  { %2495 = vmatmul.msk.bf16.gmra.mxu0 %vm244_vm1, %v3491_v28 }
 0x49a   :  { %v3513_v30 = vpop.f32.mrf.mxu3 }
 0x49d   :  { %v1105_v18 = vpop.f32.mrf.mxu0 }
 0x4a2   :  { %v1076_v36 = vpop.f32.mrf.mxu3 }
 0x4a3   :  { %v3515_v37 = vadd.f32 %v1105_v18, %v1076_v36  ;;  %v1358_v18 = vld [vmem:[%s4055_s5 + $0x10] sm:$0xff]  ;;  %v1357_v36 = vld [vmem:[%s4055_s5 + $0x8] sm:$0xff] }
 0x4a4   :  { %1399 = vmatpush.msrb.mxu3 %v1358_v18 }
 0x4a5   :  { %v3517_v0 = vpop.f32.mrf.mxu0 }
 0x4a6   :  { %1400 = vmatpush.msrb.mxu3 %v1357_v36 }
 0x4aa   :  { %v3519_v35 = vpop.f32.mrf.mxu3 }
 0x4ad   :  { %v1110_v21 = vpop.f32.mrf.mxu0 }
 0x4b2   :  { %v1081_v60 = vpop.f32.mrf.mxu3 }
 0x4b3   :  { %v3521_v1 = vadd.f32 %v1110_v21, %v1081_v60  ;;  %v1356_v60 = vld [vmem:[%s4055_s5] sm:$0xff] }
 0x4b4   :  { %1401 = vmatpush.msrb.mxu3 %v1356_v60  ;;  %v3544_v21 = vld [vmem:[%s4054_s4] ss:$0 sm:$0xff]  ;;  %s2831_s4 = smov 1  }
 0x4b5   :  { %v3527_v59 = vpop.f32.mrf.mxu0 }
 0x4ba   :  { %v3523_v26 = vpop.f32.mrf.mxu3 }
 0x4c2   :  { %v1184_v23 = vpop.f32.mrf.mxu3 }
 0x4ca   :  { %v1186_v20 = vpop.f32.mrf.mxu3 }
 0x4d2   :  { %v1189_v17 = vpop.f32.mrf.mxu3 }
 0x4da   :  { %v1191_v62 = vpop.f32.mrf.mxu3 }
 0x4e2   :  { %v1194_v13 = vpop.f32.mrf.mxu3 }
 0x4e4   :  { %v1213_v19 = vpop.f32.mrf.mxu0 }
 0x4e5   :  { %v1214_v52 = vadd.f32 %v1213_v19, %v1184_v23 }
 0x4e7   :  { %v1233_v38 = vmax.f32 %v1214_v52, 1e-12 }
 0x4e9   :  { %2680 = vrcp.f32 %v1233_v38  ;;  %v1098_v38 = vadd.f32 %v3501_v15, %v3505_v57 }
 0x4ea   :  { %v1196_v27 = vpop.f32.mrf.mxu3 }
 0x4ec   :  { %v1215_v11 = vpop.f32.mrf.mxu0 }
 0x4ed   :  { %v1216_v43 = vadd.f32 %v1215_v11, %v1186_v20 }
 0x4ef   :  { %v2681_v47 = vpop.eup %2680  ;;  %v1234_v63 = vmax.f32 %v1216_v43, 1e-12 }
 0x4f0   :  { %1251 = vperm.xlu1 %2622, %v2681_v47  }
 0x4f1   :  { %2682 = vrcp.f32 %v1234_v63 }
 0x4f2   :  { %v1199_v9 = vpop.f32.mrf.mxu3 }
 0x4f4   :  { %v1218_v44 = vpop.f32.mrf.mxu0 }
 0x4f5   :  { %v1219_v25 = vadd.f32 %v1218_v44, %v1189_v17 }
 0x4f7   :  { %v2683_v42 = vpop.eup %2682  ;;  %v1235_v61 = vmax.f32 %v1219_v25, 1e-12 }
 0x4f8   :  { %1256 = vperm.xlu1 %2622, %v2683_v42  }
 0x4f9   :  { %2684 = vrcp.f32 %v1235_v61 }
 0x4fa   :  { %v1201_v10 = vpop.f32.mrf.mxu3 }
 0x4fc   :  { %v1220_v50 = vpop.f32.mrf.mxu0 }
 0x4fd   :  { %v1221_v3 = vadd.f32 %v1220_v50, %v1191_v62 }
 0x4ff   :  { %v2685_v56 = vpop.eup %2684  ;;  %v1236_v16 = vmax.f32 %v1221_v3, 1e-12  ;;  %v1103_v3 = vadd.f32 %v3509_v6, %v3513_v30 }
 0x500   :  { %1261 = vperm.xlu1 %2622, %v2685_v56  }
 0x501   :  { %2686 = vrcp.f32 %v1236_v16 }
 0x504   :  { %v1223_v41 = vpop.f32.mrf.mxu0 }
 0x505   :  { %v1224_v5 = vadd.f32 %v1223_v41, %v1194_v13 }
 0x507   :  { %v2687_v24 = vpop.eup %2686  ;;  %v1237_v45 = vmax.f32 %v1224_v5, 1e-12 }
 0x508   :  { %1266 = vperm.xlu1 %2622, %v2687_v24  }
 0x509   :  { %2688 = vrcp.f32 %v1237_v45 }
 0x50c   :  { %v1225_v39 = vpop.f32.mrf.mxu0 }
 0x50d   :  { %v1226_v55 = vadd.f32 %v1225_v39, %v1196_v27 }
 0x50f   :  { %v2689_v40 = vpop.eup %2688  ;;  %v1238_v2 = vmax.f32 %v1226_v55, 1e-12 }
 0x510   :  { %1271 = vperm.xlu1 %2622, %v2689_v40  }
 0x511   :  { %2690 = vrcp.f32 %v1238_v2 }
 0x514   :  { %v1228_v7 = vpop.f32.mrf.mxu0 }
 0x515   :  { %v1229_v53 = vadd.f32 %v1228_v7, %v1199_v9  ;;  %v1108_v7 = vadd.f32 %v3517_v0, %v3519_v35 }
 0x517   :  { %v2691_v58 = vpop.eup %2690  ;;  %v1239_v54 = vmax.f32 %v1229_v53, 1e-12 }
 0x518   :  { %1276 = vperm.xlu1 %2622, %v2691_v58  }
 0x519   :  { %2692 = vrcp.f32 %v1239_v54 }
 0x51c   :  { %v1230_v4 = vpop.f32.mrf.mxu0 }
 0x51d   :  { %v1231_v34 = vadd.f32 %v1230_v4, %v1201_v10 }
 0x51f   :  { %v2693_v49 = vpop.eup %2692  ;;  %v1240_v8 = vmax.f32 %v1231_v34, 1e-12 }
 0x520   :  { %1281 = vperm.xlu1 %2622, %v2693_v49   ;;  %v1113_v49 = vadd.f32 %v3527_v59, %v3523_v26 }
 0x521   :  { %2694 = vrcp.f32 %v1240_v8 }
 0x527   :  { %v2695_v12 = vpop.eup %2694 }
 0x528   :  { %1286 = vperm.xlu2 %2623, %v2695_v12  }
 0x562   :  { %v1252_v23 = vpop.permute.xlu1 %1251 }
 0x563   :  { %v1289_v20 = vmul.f32 %v1252_v23, %v3499_v46 }
 0x565   :  { %v1300_v19 = vadd.f32 %v3544_v21, %v1289_v20 }
 0x567   :  { %v1316_v52 = vmin.f32 %v1300_v19, 0.0  ;;  %vm1308_vm13 = vcmp.gt.f32.partialorder %v1300_v19, 0.0 }
 0x569   :  { %v1324_v17 = vmul.f32 1.442695, %v1316_v52 }
 0x56a   :  { %v1257_v11 = vpop.permute.xlu1 %1256 }
 0x56b   :  { %2696 = vpow2.f32 %v1324_v17  ;;  %v1290_v43 = vmul.f32 %v1257_v11, %v1098_v38 }
 0x56d   :  { %v1301_v47 = vadd.f32 %v3544_v21, %v1290_v43 }
 0x56f   :  { %v1317_v63 = vmin.f32 %v1301_v47, 0.0  ;;  %vm1309_vm14 = vcmp.gt.f32.partialorder %v1301_v47, 0.0 }
 0x571   :  { %v2697_v62 = vpop.eup %2696  ;;  %v1326_v44 = vmul.f32 1.442695, %v1317_v63 }
 0x572   :  { %v2496_v25 = vadd.f32 -1.0, %v2697_v62  ;;  %v1262_v42 = vpop.permute.xlu1 %1261 }
 0x573   :  { %v1291_v46 = vmul.f32 %v1262_v42, %v3507_v51  ;;  %2698 = vpow2.f32 %v1326_v44 }
 0x574   :  { %v1348_v61 = vsel %vm1308_vm13, %v1300_v19, %v2496_v25 }
 0x575   :  { %v1302_v50 = vadd.f32 %v3544_v21, %v1291_v46  ;;  %2504 = vmatmul.msk.f32.vlgmr.msrb.gmra.mxu3 %vm1361_vm8, %v1348_v61 }
 0x577   :  { %v1318_v15 = vmin.f32 %v1302_v50, 0.0  ;;  %vm1310_vm15 = vcmp.gt.f32.partialorder %v1302_v50, 0.0 }
 0x579   :  { %v2699_v57 = vpop.eup %2698  ;;  %v1328_v13 = vmul.f32 1.442695, %v1318_v15 }
 0x57a   :  { %v1267_v56 = vpop.permute.xlu1 %1266  ;;  %v2497_v16 = vadd.f32 -1.0, %v2699_v57 }
 0x57b   :  { %v1292_v41 = vmul.f32 %v1267_v56, %v1103_v3  ;;  %2700 = vpow2.f32 %v1328_v13 }
 0x57c   :  { %v1349_v5 = vsel %vm1309_vm14, %v1301_v47, %v2497_v16 }
 0x57d   :  { %v1303_v51 = vadd.f32 %v3544_v21, %v1292_v41  ;;  %2505 = vmatmul.msk.f32.gmra.mxu3 %vm1361_vm8, %v1349_v5 }
 0x57f   :  { %v1319_v24 = vmin.f32 %v1303_v51, 0.0  ;;  %vm1311_vm0 = vcmp.gt.f32.partialorder %v1303_v51, 0.0 }
 0x581   :  { %v2701_v45 = vpop.eup %2700  ;;  %v1330_v27 = vmul.f32 1.442695, %v1319_v24 }
 0x582   :  { %v1272_v39 = vpop.permute.xlu1 %1271  ;;  %v2498_v55 = vadd.f32 -1.0, %v2701_v45 }
 0x583   :  { %v1293_v40 = vmul.f32 %v1272_v39, %v3515_v37  ;;  %2702 = vpow2.f32 %v1330_v27  ;;  %v1287_v37 = vpop.permute.xlu2 %1286 }
 0x584   :  { %v1350_v6 = vsel %vm1310_vm15, %v1302_v50, %v2498_v55  ;;  %v1296_v12 = vmul.f32 %v1287_v37, %v1113_v49  ;;  %v2781_v37 = vld [vmem:[%s4051_s1 + $0x18] sm:$0xff]  ;;  %v2783_v49 = vld [vmem:[%s4051_s1 + $0x28] sm:$0xff] }
 0x585   :  { %v1304_v30 = vadd.f32 %v3544_v21, %v1293_v40  ;;  %2506 = vmatmul.msk.f32.gmra.mxu3 %vm1361_vm8, %v1350_v6 }
 0x586   :  { %v1307_v60 = vadd.f32 %v3544_v21, %v1296_v12  ;;  %v2784_v12 = vld [vmem:[%s4051_s1 + $0x30] sm:$0xff] }
 0x587   :  { %v1320_v2 = vmin.f32 %v1304_v30, 0.0  ;;  %vm1312_vm2 = vcmp.gt.f32.partialorder %v1304_v30, 0.0 }
 0x588   :  { %v1323_v52 = vmin.f32 %v1307_v60, 0.0  ;;  %vm1315_vm5 = vcmp.gt.f32.partialorder %v1307_v60, 0.0 }
 0x589   :  { %v2703_v9 = vpop.eup %2702  ;;  %v1332_v53 = vmul.f32 1.442695, %v1320_v2 }
 0x58a   :  { %v1277_v58 = vpop.permute.xlu1 %1276  ;;  %v2499_v54 = vadd.f32 -1.0, %v2703_v9  ;;  %v1338_v17 = vmul.f32 1.442695, %v1323_v52  ;;  %v2791_v52 = vld [vmem:[%s4051_s1 + $0x50] sm:$0xff] }
 0x58b   :  { %v1294_v10 = vmul.f32 %v1277_v58, %v1108_v7  ;;  %2704 = vpow2.f32 %v1332_v53 }
 0x58c   :  { %v1351_v4 = vsel %vm1311_vm0, %v1303_v51, %v2499_v54  ;;  %v2778_v54 = vld [vmem:[%s4051_s1] sm:$0xff] }
 0x58d   :  { %v1305_v34 = vadd.f32 %v3544_v21, %v1294_v10  ;;  %2507 = vmatmul.msk.f32.gmra.mxu3 %vm1361_vm8, %v1351_v4  ;;  %v2779_v10 = vld [vmem:[%s4051_s1 + $0x8] sm:$0xff]  ;;  %v2780_v4 = vld [vmem:[%s4051_s1 + $0x10] sm:$0xff] }
 0x58f   :  { %v1321_v8 = vmin.f32 %v1305_v34, 0.0  ;;  %vm1313_vm3 = vcmp.gt.f32.partialorder %v1305_v34, 0.0 }
 0x591   :  { %v1334_v33 = vmul.f32 1.442695, %v1321_v8  ;;  %v2705_v18 = vpop.eup %2704 }
 0x592   :  { %v1282_v0 = vpop.permute.xlu1 %1281  ;;  %v2500_v36 = vadd.f32 -1.0, %v2705_v18 }
 0x593   :  { %2706 = vpow2.f32 %v1334_v33  ;;  %v1295_v35 = vmul.f32 %v1282_v0, %v3521_v1  ;;  %v2785_v0 = vld [vmem:[%s4051_s1 + $0x38] sm:$0xff] }
 0x594   :  { %v1352_v20 = vsel %vm1312_vm2, %v1304_v30, %v2500_v36  ;;  %v2786_v36 = vld [vmem:[%s4052_s2] sm:$0xff] }
 0x595   :  { %v1306_v23 = vadd.f32 %v3544_v21, %v1295_v35  ;;  %2508 = vmatmul.msk.f32.gmra.mxu3 %vm1361_vm8, %v1352_v20  ;;  %v2789_v20 = vld [vmem:[%s4051_s1 + $0x48] sm:$0xff] }
 0x597   :  { %v1322_v19 = vmin.f32 %v1306_v23, 0.0  ;;  %vm1314_vm4 = vcmp.gt.f32.partialorder %v1306_v23, 0.0 }
 0x599   :  { %v2707_v26 = vpop.eup %2706  ;;  %v1336_v59 = vmul.f32 1.442695, %v1322_v19  ;;  %v2790_v19 = vld [vmem:[%s4052_s2 + $0x10] sm:$0xff] }
 0x59a   :  { %v2501_v38 = vadd.f32 -1.0, %v2707_v26  ;;  %v2792_v26 = vld [vmem:[%s4052_s2 + $0x18] sm:$0xff] }
 0x59b   :  { %2708 = vpow2.f32 %v1336_v59  ;;  %v2793_v59 = vld [vmem:[%s4051_s1 + $0x58] sm:$0xff] }
 0x59c   :  { %v1353_v11 = vsel %vm1313_vm3, %v1305_v34, %v2501_v38  ;;  %2710 = vpow2.f32 %v1338_v17  ;;  %v2782_v34 = vld [vmem:[%s4051_s1 + $0x20] sm:$0xff]  ;;  %v2795_v17 = vld [vmem:[%s4052_s2 + $0x28] sm:$0xff] }
 0x59d   :  { %2509 = vmatmul.msk.f32.gmra.mxu3 %vm1361_vm8, %v1353_v11  ;;  %v2794_v38 = vld [vmem:[%s4052_s2 + $0x20] sm:$0xff] }
 0x5a1   :  { %v2709_v1 = vpop.eup %2708 }
 0x5a2   :  { %v2502_v43 = vadd.f32 -1.0, %v2709_v1  ;;  %v2711_v21 = vpop.eup %2710  ;;  %v2796_v1 = vld [vmem:[%s4052_s2 + $0x40] sm:$0xff] }
 0x5a3   :  { %v2503_v63 = vadd.f32 -1.0, %v2711_v21 }
 0x5a4   :  { %v1354_v47 = vsel %vm1314_vm4, %v1306_v23, %v2502_v43  ;;  %v2788_v23 = vld [vmem:[%s4052_s2 + $0x8] sm:$0xff] }
 0x5a5   :  { %2510 = vmatmul.msk.f32.gmra.mxu3 %vm1361_vm8, %v1354_v47  ;;  %v1355_v62 = vsel %vm1315_vm5, %v1307_v60, %v2503_v63  ;;  %v2787_v60 = vld [vmem:[%s4051_s1 + $0x40] sm:$0xff]  ;;  %s2832_s1 = smov 126   ;;  %v2798_v63 = vld [vmem:[%s4052_s2 + $0x50] sm:$0xff] }
 0x5ad   :  { %2511 = vmatmul.msk.f32.gmra.mxu3 %vm1361_vm8, %v1355_v62 }
 0x5f8   :  { %v1403_v44 = vpop.f32.mrf.mxu3 }
 0x5f9   :  { %v1427_v30 = vpack.c.bf16 %v1403_v44, %v1403_v44 }
 0x5fb   :  { %v1443_v53 = vunpack.c.l.b16 %v1427_v30 }
 0x600   :  { %v1406_v25 = vpop.f32.mrf.mxu3 }
 0x601   :  { %v1428_v40 = vpack.c.bf16 %v1406_v25, %v1406_v25  ;;  %v2799_v25 = vld [vmem:[%s4052_s2 + $0x58] sm:$0xff] }
 0x603   :  { %v1444_v9 = vunpack.c.l.b16 %v1428_v40 }
 0x605   :  { %v1451_v58 = vpack.c.b16 %v1444_v9, %v1443_v53 }
 0x608   :  { %v1409_v42 = vpop.f32.mrf.mxu3 }
 0x609   :  { %v1429_v55 = vpack.c.bf16 %v1409_v42, %v1409_v42 }
 0x60b   :  { %v1445_v2 = vunpack.c.l.b16 %v1429_v55 }
 0x610   :  { %v1412_v46 = vpop.f32.mrf.mxu3 }
 0x611   :  { %v1430_v27 = vpack.c.bf16 %v1412_v46, %v1412_v46 }
 0x613   :  { %v1446_v6 = vunpack.c.l.b16 %v1430_v27 }
 0x615   :  { %v1452_v7 = vpack.c.b16 %v1446_v6, %v1445_v2 }
 0x618   :  { %v1415_v61 = vpop.f32.mrf.mxu3 }
 0x619   :  { %v1431_v50 = vpack.c.bf16 %v1415_v61, %v1415_v61 }
 0x61b   :  { %v1447_v3 = vunpack.c.l.b16 %v1431_v50 }
 0x620   :  { %v1418_v15 = vpop.f32.mrf.mxu3 }
 0x621   :  { %v1432_v57 = vpack.c.bf16 %v1418_v15, %v1418_v15 }
 0x623   :  { %v1448_v13 = vunpack.c.l.b16 %v1432_v57 }
 0x625   :  { %v1453_v56 = vpack.c.b16 %v1448_v13, %v1447_v3 }
 0x627   :  { %1532 = vrot.lane.b32.xlu1 %v1453_v56, %s2831_s4 }
 0x628   :  { %v1421_v16 = vpop.f32.mrf.mxu3 }
 0x629   :  { %v1433_v41 = vpack.c.bf16 %v1421_v16, %v1421_v16 }
 0x62b   :  { %v1449_v24 = vunpack.c.l.b16 %v1433_v41 }
 0x630   :  { %v1424_v5 = vpop.f32.mrf.mxu3 }
 0x631   :  { %v1434_v51 = vpack.c.bf16 %v1424_v5, %v1424_v5 }
 0x633   :  { %v1450_v45 = vunpack.c.l.b16 %v1434_v51 }
 0x635   :  { %v1454_v39 = vpack.c.b16 %v1450_v45, %v1449_v24 }
 0x637   :  { %1534 = vrot.lane.b32.xlu1 %v1454_v39, %s2831_s4  ;;  %1463 = vmatpush.bf16.msrb.mxu0 %v1454_v39 }
 0x63b   :  { %1464 = vmatpush.bf16.msrb.mxu0 %v1453_v56 }
 0x63f   :  { %1530 = vrot.lane.b32.xlu1 %v1452_v7, %s2831_s4  ;;  %1465 = vmatpush.bf16.msrb.mxu0 %v1452_v7 }
 0x643   :  { %1466 = vmatpush.bf16.msrb.mxu0 %v1451_v58 }
 0x646   :  { %2512 = vmatmul.msk.bf16.vlgmr.msrb.gmra.mxu0 %vm244_vm1, %v2778_v54 }
 0x647   :  { %1528 = vrot.lane.b32.xlu1 %v1451_v58, %s2831_s4 }
 0x656   :  { %2513 = vmatmul.msk.bf16.gmra.mxu0 %vm244_vm1, %v2779_v10 }
 0x666   :  { %2514 = vmatmul.msk.bf16.gmra.mxu0 %vm244_vm1, %v2780_v4 }
 0x676   :  { %2515 = vmatmul.msk.bf16.gmra.mxu0 %vm244_vm1, %v2781_v37 }
 0x686   :  { %2516 = vmatmul.msk.bf16.gmra.mxu0 %vm244_vm1, %v2782_v34 }
 0x696   :  { %2517 = vmatmul.msk.bf16.gmra.mxu0 %vm244_vm1, %v2783_v49 }
 0x699   :  { %v1533_v8 = vpop.permute.xlu1 %1532 }
 0x6a6   :  { %2518 = vmatmul.msk.bf16.gmra.mxu0 %vm244_vm1, %v2784_v12 }
 0x6a9   :  { %v1535_v33 = vpop.permute.xlu1 %1534 }
 0x6aa   :  { %1544 = vmatpush.bf16.msrb.mxu1 %v1535_v33 }
 0x6ae   :  { %1545 = vmatpush.bf16.msrb.mxu1 %v1533_v8 }
 0x6b1   :  { %v1531_v18 = vpop.permute.xlu1 %1530 }
 0x6b2   :  { %1546 = vmatpush.bf16.msrb.mxu1 %v1531_v18 }
 0x6b6   :  { %2519 = vmatmul.msk.bf16.gmra.mxu0 %vm244_vm1, %v2785_v0 }
 0x6b9   :  { %v1529_v35 = vpop.permute.xlu1 %1528 }
 0x6ba   :  { %1547 = vmatpush.bf16.msrb.mxu1 %v1529_v35 }
 0x6bd   :  { %2524 = vmatmul.msk.bf16.vlgmr.msrb.gmra.mxu1 %vm244_vm1, %v2786_v36 }
 0x6c3   :  { %v3675_v61 = vpop.f32.mrf.mxu0 }
 0x6c4   :  { %4146 = vst [vmem:[#allocation10_spill] sm:$0xff] %v3675_v61 }
 0x6c6   :  { %2520 = vmatmul.msk.bf16.gmra.mxu0 %vm244_vm1, %v2787_v60 }
 0x6cb   :  { %v3678_v15 = vpop.f32.mrf.mxu0 }
 0x6cc   :  { %4147 = vst [vmem:[#allocation11_spill] sm:$0xff] %v3678_v15 }
 0x6cd   :  { %2525 = vmatmul.msk.bf16.gmra.mxu1 %vm244_vm1, %v2788_v23 }
 0x6d3   :  { %v3681_v13 = vpop.f32.mrf.mxu0 }
 0x6d4   :  { %4148 = vst [vmem:[#allocation5_spill] sm:$0xff] %v3681_v13 }
 0x6d6   :  { %2521 = vmatmul.msk.bf16.gmra.mxu0 %vm244_vm1, %v2789_v20 }
 0x6db   :  { %v3685_v16 = vpop.f32.mrf.mxu0 }
 0x6dc   :  { %4149 = vst [vmem:[#allocation16_spill] sm:$0xff] %v3685_v16 }
 0x6dd   :  { %2526 = vmatmul.msk.bf16.gmra.mxu1 %vm244_vm1, %v2790_v19 }
 0x6e3   :  { %v3688_v5 = vpop.f32.mrf.mxu0 }
 0x6e6   :  { %2522 = vmatmul.msk.bf16.gmra.mxu0 %vm244_vm1, %v2791_v52 }
 0x6eb   :  { %v3691_v24 = vpop.f32.mrf.mxu0 }
 0x6ed   :  { %2527 = vmatmul.msk.bf16.gmra.mxu1 %vm244_vm1, %v2792_v26 }
 0x6f3   :  { %v3694_v39 = vpop.f32.mrf.mxu0 }
 0x6f6   :  { %2523 = vmatmul.msk.bf16.gmra.mxu0 %vm244_vm1, %v2793_v59 }
 0x6fb   :  { %v3698_v40 = vpop.f32.mrf.mxu0 }
 0x6fd   :  { %2528 = vmatmul.msk.bf16.gmra.mxu1 %vm244_vm1, %v2794_v38 }
 0x703   :  { %v3701_v30 = vpop.f32.mrf.mxu0 }
 0x70b   :  { %v3704_v9 = vpop.f32.mrf.mxu0 }
 0x70d   :  { %2529 = vmatmul.msk.bf16.gmra.mxu1 %vm244_vm1, %v2795_v17 }
 0x713   :  { %v3707_v58 = vpop.f32.mrf.mxu0 }
 0x71b   :  { %v3711_v10 = vpop.f32.mrf.mxu0 }
 0x71d   :  { %2530 = vmatmul.msk.bf16.gmra.mxu1 %vm244_vm1, %v3466_v48  ;;  %v2797_v48 = vld [vmem:[%s4052_s2 + $0x48] sm:$0xff]  ;;  %s2834_s2 = smov 2  }
 0x723   :  { %v3714_v37 = vpop.f32.mrf.mxu0 }
 0x72b   :  { %v3716_v34 = vpop.f32.mrf.mxu0 }
 0x72d   :  { %2531 = vmatmul.msk.bf16.gmra.mxu1 %vm244_vm1, %v3472_v32 }
 0x733   :  { %v3718_v8 = vpop.f32.mrf.mxu0 }
 0x73a   :  { %v1549_v11 = vpop.f32.mrf.mxu1 }
 0x73b   :  { %1633 = vrot.lane.b32.xlu1 %v1549_v11, %s2832_s1  ;;  %v3720_v33 = vpop.f32.mrf.mxu0 }
 0x73d   :  { %2532 = vmatmul.msk.bf16.gmra.mxu1 %vm244_vm1, %v2796_v1 }
 0x742   :  { %v1551_v43 = vpop.f32.mrf.mxu1 }
 0x743   :  { %1635 = vrot.lane.b32.xlu1 %v1551_v43, %s2832_s1  ;;  %v3722_v35 = vpop.f32.mrf.mxu0 }
 0x744   :  { %4150 = vst [vmem:[#allocation17_spill] sm:$0xff] %v3722_v35 }
 0x74a   :  { %v1554_v47 = vpop.f32.mrf.mxu1 }
 0x74b   :  { %1637 = vrot.lane.b32.xlu0 %v1554_v47, %s2832_s1  ;;  %v3724_v23 = vpop.f32.mrf.mxu0 }
 0x74c   :  { %4151 = vst [vmem:[#allocation15_spill] sm:$0xff] %v3724_v23 }
 0x74d   :  { %2533 = vmatmul.msk.bf16.gmra.mxu1 %vm244_vm1, %v2797_v48 }
 0x752   :  { %v1556_v32 = vpop.f32.mrf.mxu1 }
 0x753   :  { %1639 = vrot.lane.b32.xlu1 %v1556_v32, %s2832_s1  ;;  %v3726_v26 = vpop.f32.mrf.mxu0 }
 0x754   :  { %4152 = vst [vmem:[#allocation14_spill] sm:$0xff] %v3726_v26 }
 0x75a   :  { %v1559_v21 = vpop.f32.mrf.mxu1 }
 0x75b   :  { %1641 = vrot.lane.b32.xlu0 %v1559_v21, %s2832_s1  ;;  %v3728_v11 = vpop.f32.mrf.mxu0 }
 0x75c   :  { %4153 = vst [vmem:[#allocation13_spill] sm:$0xff] %v3728_v11 }
 0x75d   :  { %2534 = vmatmul.msk.bf16.gmra.mxu1 %vm244_vm1, %v2798_v63 }
 0x762   :  { %v1561_v62 = vpop.f32.mrf.mxu1 }
 0x763   :  { %1643 = vrot.lane.b32.xlu1 %v1561_v62, %s2832_s1  ;;  %v3734_v32 = vpop.f32.mrf.mxu0 }
 0x764   :  { %4154 = vst [vmem:[#allocation6_spill] sm:$0xff] %v3734_v32 }
 0x76a   :  { %v1564_v44 = vpop.f32.mrf.mxu1 }
 0x76b   :  { %1645 = vrot.lane.b32.xlu0 %v1564_v44, %s2832_s1 }
 0x76d   :  { %2535 = vmatmul.msk.bf16.gmra.mxu1 %vm244_vm1, %v2799_v25 }
 0x772   :  { %v1566_v42 = vpop.f32.mrf.mxu1 }
 0x773   :  { %1647 = vrot.lane.b32.xlu1 %v1566_v42, %s2832_s1 }
 0x77a   :  { %v1569_v46 = vpop.f32.mrf.mxu1 }
 0x77b   :  { %1649 = vrot.lane.b32.xlu0 %v1569_v46, %s2832_s1 }
 0x782   :  { %v1571_v50 = vpop.f32.mrf.mxu1 }
 0x783   :  { %1651 = vrot.lane.b32.xlu1 %v1571_v50, %s2832_s1 }
 0x78a   :  { %v1574_v57 = vpop.f32.mrf.mxu1 }
 0x78b   :  { %1653 = vrot.lane.b32.xlu0 %v1574_v57, %s2832_s1 }
 0x792   :  { %v1576_v3 = vpop.f32.mrf.mxu1 }
 0x793   :  { %1655 = vrot.lane.b32.xlu1 %v1576_v3, %s2832_s1 }
 0x79a   :  { %v1579_v56 = vpop.f32.mrf.mxu1 }
 0x79b   :  { %1657 = vrot.lane.b32.xlu0 %v1579_v56, %s2832_s1 }
 0x7a2   :  { %v1581_v41 = vpop.f32.mrf.mxu1 }
 0x7a3   :  { %1659 = vrot.lane.b32.xlu1 %v1581_v41, %s2832_s1 }
 0x7aa   :  { %v1584_v51 = vpop.f32.mrf.mxu1 }
 0x7ab   :  { %1661 = vrot.lane.b32.xlu0 %v1584_v51, %s2832_s1 }
 0x7ad   :  { %v1634_v49 = vpop.permute.xlu1 %1633 }
 0x7ae   :  { %v1705_v21 = vadd.f32 %v1634_v49, %v3675_v61 }
 0x7b0   :  { %vm1729_vm10 = vcmp.gt.f32.partialorder %v1705_v21, 0.0  ;;  %v1753_v3 = vmul.f32 0.2, %v1705_v21 }
 0x7b2   :  { %v1586_v45 = vpop.f32.mrf.mxu1  ;;  %v3752_v49 = vsel %vm1729_vm10, %v1705_v21, %v1753_v3 }
 0x7b3   :  { %1663 = vrot.lane.b32.xlu1 %v1586_v45, %s2832_s1 }
 0x7b5   :  { %v1636_v12 = vpop.permute.xlu1 %1635 }
 0x7b6   :  { %v1706_v63 = vadd.f32 %v1636_v12, %v3678_v15 }
 0x7b8   :  { %v1754_v56 = vmul.f32 0.2, %v1706_v63  ;;  %vm1730_vm11 = vcmp.gt.f32.partialorder %v1706_v63, 0.0 }
 0x7ba   :  { %v1589_v27 = vpop.f32.mrf.mxu1  ;;  %v3754_v12 = vsel %vm1730_vm11, %v1706_v63, %v1754_v56 }
 0x7bb   :  { %1665 = vrot.lane.b32.xlu2 %v1589_v27, %s2832_s1 }
 0x7bd   :  { %v1638_v0 = vpop.permute.xlu0 %1637 }
 0x7be   :  { %v1707_v62 = vadd.f32 %v1638_v0, %v3681_v13 }
 0x7c0   :  { %vm1731_vm12 = vcmp.gt.f32.partialorder %v1707_v62, 0.0  ;;  %v1755_v27 = vmul.f32 0.2, %v1707_v62 }
 0x7c2   :  { %v1591_v55 = vpop.f32.mrf.mxu1 }
 0x7c3   :  { %1667 = vrot.lane.b32.xlu0 %v1591_v55, %s2832_s1 }
 0x7c5   :  { %v1640_v18 = vpop.permute.xlu1 %1639 }
 0x7c6   :  { %v1708_v55 = vadd.f32 %v1640_v18, %v3685_v16 }
 0x7c8   :  { %vm1732_vm15 = vcmp.gt.f32.partialorder %v1708_v55, 0.0  ;;  %v1756_v18 = vmul.f32 0.2, %v1708_v55 }
 0x7ca   :  { %v1594_v6 = vpop.f32.mrf.mxu1 }
 0x7cb   :  { %1669 = vrot.lane.b32.xlu1 %v1594_v6, %s2832_s1 }
 0x7cd   :  { %v1642_v60 = vpop.permute.xlu0 %1641 }
 0x7ce   :  { %v1709_v47 = vadd.f32 %v1642_v60, %v3688_v5  ;;  %v3758_v60 = vpop.f32.mrf.mxu0 }
 0x7cf   :  { %4155 = vst [vmem:[#allocation12_spill] sm:$0xff] %v3758_v60 }
 0x7d0   :  { %v1757_v44 = vmul.f32 0.2, %v1709_v47  ;;  %vm1733_vm7 = vcmp.gt.f32.partialorder %v1709_v47, 0.0 }
 0x7d2   :  { %v1596_v2 = vpop.f32.mrf.mxu1  ;;  %v3746_v6 = vsel %vm1733_vm7, %v1709_v47, %v1757_v44 }
 0x7d3   :  { %1671 = vrot.lane.b32.xlu2 %v1596_v2, %s2832_s1 }
 0x7d5   :  { %v1644_v36 = vpop.permute.xlu1 %1643 }
 0x7d6   :  { %v1710_v48 = vadd.f32 %v1644_v36, %v3691_v24  ;;  %v3756_v36 = vsel %vm1731_vm12, %v1707_v62, %v1755_v27  ;;  %v1802_v62 = vsel %vm1801_vm6, %v3752_v49, -inf }
 0x7d8   :  { %v1758_v25 = vmul.f32 0.2, %v1710_v48  ;;  %vm1734_vm9 = vcmp.gt.f32.partialorder %v1710_v48, 0.0 }
 0x7da   :  { %v1599_v7 = vpop.f32.mrf.mxu1  ;;  %v3748_v2 = vsel %vm1734_vm9, %v1710_v48, %v1758_v25 }
 0x7db   :  { %1673 = vrot.lane.b32.xlu0 %v1599_v7, %s2832_s1 }
 0x7dd   :  { %v1646_v19 = vpop.permute.xlu0 %1645 }
 0x7de   :  { %v1711_v42 = vadd.f32 %v1646_v19, %v3694_v39  ;;  %v1808_v19 = vsel %vm1801_vm6, %v3748_v2, -inf }
 0x7e0   :  { %v1759_v7 = vmul.f32 0.2, %v1711_v42  ;;  %vm1735_vm8 = vcmp.gt.f32.partialorder %v1711_v42, 0.0 }
 0x7e2   :  { %v1601_v53 = vpop.f32.mrf.mxu1 }
 0x7e3   :  { %1675 = vrot.lane.b32.xlu1 %v1601_v53, %s2832_s1 }
 0x7e5   :  { %v1648_v20 = vpop.permute.xlu1 %1647 }
 0x7e6   :  { %v1712_v46 = vadd.f32 %v1648_v20, %v3698_v40  ;;  %v1806_v20 = vsel %vm1801_vm6, %v3746_v6, -inf }
 0x7e8   :  { %v1760_v53 = vmul.f32 0.2, %v1712_v46  ;;  %vm1736_vm13 = vcmp.gt.f32.partialorder %v1712_v46, 0.0 }
 0x7ea   :  { %v1604_v54 = vpop.f32.mrf.mxu1 }
 0x7eb   :  { %1677 = vrot.lane.b32.xlu2 %v1604_v54, %s2832_s1 }
 0x7ed   :  { %v1650_v59 = vpop.permute.xlu0 %1649 }
 0x7ee   :  { %v1713_v57 = vadd.f32 %v1650_v59, %v3701_v30  ;;  %v3766_v59 = vsel %vm1736_vm13, %v1712_v46, %v1760_v53  ;;  %v1804_v46 = vsel %vm1801_vm6, %v3756_v36, -inf }
 0x7f0   :  { %v1761_v54 = vmul.f32 0.2, %v1713_v57  ;;  %vm1737_vm14 = vcmp.gt.f32.partialorder %v1713_v57, 0.0 }
 0x7f2   :  { %v1606_v4 = vpop.f32.mrf.mxu1  ;;  %v3768_v47 = vsel %vm1737_vm14, %v1713_v57, %v1761_v54  ;;  %v3781_v57 = vsel %vm1732_vm15, %v1708_v55, %v1756_v18 }
 0x7f3   :  { %1679 = vrot.lane.b32.xlu0 %v1606_v4, %s2832_s1  ;;  %v1814_v27 = vsel %vm1801_vm6, %v3768_v47, -inf }
 0x7f5   :  { %v1652_v52 = vpop.permute.xlu1 %1651 }
 0x7f6   :  { %v1714_v41 = vadd.f32 %v1652_v52, %v3704_v9  ;;  %v3764_v52 = vsel %vm1735_vm8, %v1711_v42, %v1759_v7  ;;  %v1803_v42 = vsel %vm1801_vm6, %v3754_v12, -inf }
 0x7f7   :  { %v1809_v56 = vmax.f32 %v1803_v42, %v1808_v19 }
 0x7f8   :  { %v1762_v0 = vmul.f32 0.2, %v1714_v41  ;;  %vm1738_vm0 = vcmp.gt.f32.partialorder %v1714_v41, 0.0 }
 0x7fa   :  { %v3774_v44 = vsel %vm1738_vm0, %v1714_v41, %v1762_v0  ;;  %v1812_v41 = vsel %vm1801_vm6, %v3766_v59, -inf }
 0x7fb   :  { %v1816_v7 = vsel %vm1801_vm6, %v3774_v44, -inf }
 0x7fd   :  { %v1654_v17 = vpop.permute.xlu0 %1653 }
 0x7fe   :  { %v1715_v4 = vadd.f32 %v1654_v17, %v3707_v58 }
 0x800   :  { %v1763_v48 = vmul.f32 0.2, %v1715_v4  ;;  %vm1739_vm2 = vcmp.gt.f32.partialorder %v1715_v4, 0.0 }
 0x802   :  { %v3791_v53 = vsel %vm1739_vm2, %v1715_v4, %v1763_v48  ;;  %v3801_v4 = vmax.f32 %v1809_v56, %v1816_v7 }
 0x805   :  { %v1656_v38 = vpop.permute.xlu1 %1655 }
 0x806   :  { %v1716_v21 = vadd.f32 %v1656_v38, %v3711_v10  ;;  %v1807_v38 = vmax.f32 %v1802_v62, %v1806_v20  ;;  %v1805_v20 = vsel %vm1801_vm6, %v3781_v57, -inf }
 0x807   :  { %v1813_v42 = vmax.f32 %v1805_v20, %v1812_v41 }
 0x808   :  { %v1764_v54 = vmul.f32 0.2, %v1716_v21  ;;  %vm1740_vm3 = vcmp.gt.f32.partialorder %v1716_v21, 0.0  ;;  %v3799_v31 = vmax.f32 %v1807_v38, %v1814_v27 }
 0x80a   :  { %v3807_v22 = vsel %vm1740_vm3, %v1716_v21, %v1764_v54 }
 0x80d   :  { %v1658_v43 = vpop.permute.xlu0 %1657 }
 0x80e   :  { %v1717_v63 = vadd.f32 %v1658_v43, %v3714_v37  ;;  %v1810_v43 = vsel %vm1801_vm6, %v3764_v52, -inf }
 0x80f   :  { %v1811_v19 = vmax.f32 %v1804_v46, %v1810_v43  ;;  %v3812_v43 = vpop.f32.mrf.mxu0 }
 0x810   :  { %v1765_v0 = vmul.f32 0.2, %v1717_v63  ;;  %vm1741_vm4 = vcmp.gt.f32.partialorder %v1717_v63, 0.0 }
 0x815   :  { %v3730_v1 = vpop.permute.xlu1 %1659  ;;  %v1666_v51 = vpop.permute.xlu2 %1665 }
 0x816   :  { %v1718_v55 = vadd.f32 %v3730_v1, %v3716_v34  ;;  %v1721_v18 = vadd.f32 %v1666_v51, %v3722_v35  ;;  %v1818_v1 = vsel %vm1801_vm6, %v3791_v53, -inf  ;;  %v3809_v51 = vsel %vm1741_vm4, %v1717_v63, %v1765_v0 }
 0x817   :  { %v1819_v54 = vmax.f32 %v1811_v19, %v1818_v1  ;;  %v1820_v63 = vsel %vm1801_vm6, %v3807_v22, -inf  ;;  %v1822_v14 = vsel %vm1801_vm6, %v3809_v51, -inf }
 0x818   :  { %vm1742_vm5 = vcmp.gt.f32.partialorder %v1718_v55, 0.0  ;;  %vm1745_vm7 = vcmp.gt.f32.partialorder %v1721_v18, 0.0  ;;  %v1769_v38 = vmul.f32 0.2, %v1721_v18  ;;  %v1821_v15 = vmax.f32 %v1813_v42, %v1820_v63 }
 0x819   :  { %v1823_v42 = vmax.f32 %v3799_v31, %v1822_v14 }
 0x81d   :  { %v1662_v45 = vpop.permute.xlu0 %1661 }
 0x81e   :  { %v1719_v62 = vadd.f32 %v1662_v45, %v3718_v8  ;;  %v1766_v45 = vmul.f32 0.2, %v1718_v55 }
 0x820   :  { %v1767_v27 = vmul.f32 0.2, %v1719_v62  ;;  %vm1743_vm9 = vcmp.gt.f32.partialorder %v1719_v62, 0.0 }
 0x825   :  { %v3741_v50 = vpop.permute.xlu1 %1663 }
 0x826   :  { %v1720_v48 = vadd.f32 %v3741_v50, %v3720_v33 }
 0x828   :  { %vm1744_vm10 = vcmp.gt.f32.partialorder %v1720_v48, 0.0 }
 0x82d   :  { %v1672_v25 = vpop.permute.xlu2 %1671 }
 0x82e   :  { %v1724_v50 = vadd.f32 %v1672_v25, %v3728_v11  ;;  %v3824_v25 = vsel %vm1742_vm5, %v1718_v55, %v1766_v45 }
 0x82f   :  { %v1824_v55 = vsel %vm1801_vm6, %v3824_v25, -inf }
 0x830   :  { %v1772_v19 = vmul.f32 0.2, %v1724_v50  ;;  %vm1748_vm12 = vcmp.gt.f32.partialorder %v1724_v50, 0.0 }
 0x835   :  { %v1668_v3 = vpop.permute.xlu0 %1667 }
 0x836   :  { %v1722_v46 = vadd.f32 %v1668_v3, %v3724_v23  ;;  %v1768_v3 = vmul.f32 0.2, %v1720_v48 }
 0x838   :  { %v1770_v0 = vmul.f32 0.2, %v1722_v46  ;;  %vm1746_vm11 = vcmp.gt.f32.partialorder %v1722_v46, 0.0  ;;  %v1792_v35 = vsel %vm1744_vm10, %v1720_v48, %v1768_v3  ;;  %v3837_v48 = vsel %vm1748_vm12, %v1724_v50, %v1772_v19  ;;  %v3849_v3 = vpop.f32.mrf.mxu0 }
 0x839   :  { %4156 = vst [vmem:[#allocation8_spill] sm:$0xff] %v3849_v3  ;;  %v1825_v50 = vmax.f32 %v3801_v4, %v1824_v55 }
 0x83d   :  { %v1670_v17 = vpop.permute.xlu1 %1669 }
 0x83e   :  { %v1723_v7 = vadd.f32 %v1670_v17, %v3726_v26  ;;  %v3829_v17 = vsel %vm1743_vm9, %v1719_v62, %v1767_v27  ;;  %v1828_v27 = vsel %vm1801_vm6, %v1792_v35, -inf }
 0x83f   :  { %v1826_v62 = vsel %vm1801_vm6, %v3829_v17, -inf }
 0x840   :  { %v1771_v1 = vmul.f32 0.2, %v1723_v7  ;;  %vm1747_vm8 = vcmp.gt.f32.partialorder %v1723_v7, 0.0  ;;  %v1827_v31 = vmax.f32 %v1819_v54, %v1826_v62 }
 0x842   :  { %v3839_v45 = vsel %vm1747_vm8, %v1723_v7, %v1771_v1 }
 0x843   :  { %v1834_v19 = vsel %vm1801_vm6, %v3839_v45, -inf }
 0x845   :  { %v1678_v56 = vpop.permute.xlu2 %1677 }
 0x846   :  { %v1727_v20 = vadd.f32 %v1678_v56, %v3812_v43  ;;  %v3831_v56 = vsel %vm1746_vm11, %v1722_v46, %v1770_v0 }
 0x847   :  { %v1832_v63 = vsel %vm1801_vm6, %v3831_v56, -inf }
 0x848   :  { %vm1751_vm14 = vcmp.gt.f32.partialorder %v1727_v20, 0.0  ;;  %v1833_v16 = vmax.f32 %v1825_v50, %v1832_v63 }
 0x84d   :  { %v1674_v41 = vpop.permute.xlu0 %1673 }
 0x84e   :  { %v1725_v29 = vadd.f32 %v1674_v41, %v3734_v32  ;;  %v1775_v41 = vmul.f32 0.2, %v1727_v20 }
 0x850   :  { %v1773_v61 = vmul.f32 0.2, %v1725_v29  ;;  %vm1749_vm15 = vcmp.gt.f32.partialorder %v1725_v29, 0.0  ;;  %v1799_v7 = vsel %vm1751_vm14, %v1727_v20, %v1775_v41  ;;  %v1835_v41 = vmax.f32 %v1827_v31, %v1834_v19 }
 0x855   :  { %v1676_v28 = vpop.permute.xlu1 %1675 }
 0x856   :  { %v1726_v21 = vadd.f32 %v1676_v28, %v3758_v60  ;;  %v3827_v28 = vsel %vm1745_vm7, %v1721_v18, %v1769_v38  ;;  %v2833_v18 = vmov 126  }
 0x857   :  { %2626 = vset.pattern.permute.xlu0 %v2833_v18  ;;  %2625 = vset.pattern.permute.xlu2 %v2833_v18  ;;  %v1830_v38 = vsel %vm1801_vm6, %v3827_v28, -inf }
 0x858   :  { %v1774_v23 = vmul.f32 0.2, %v1726_v21  ;;  %vm1750_vm13 = vcmp.gt.f32.partialorder %v1726_v21, 0.0  ;;  %2624 = vset.pattern.permute.xlu1 %v2833_v18  ;;  %v1829_v18 = vmax.f32 %v1821_v15, %v1828_v27  ;;  %v1831_v20 = vmax.f32 %v1823_v42, %v1830_v38 }
 0x85a   :  { %v3841_v46 = vsel %vm1750_vm13, %v1726_v21, %v1774_v23  ;;  %v3854_v23 = vsel %vm1749_vm15, %v1725_v29, %v1773_v61  ;;  %v1836_v21 = vsel %vm1801_vm6, %v3837_v48, -inf  ;;  %v1842_v29 = vsel %vm1801_vm6, %v1799_v7, -inf }
 0x85b   :  { %v1840_v1 = vsel %vm1801_vm6, %v3841_v46, -inf  ;;  %v1838_v61 = vsel %vm1801_vm6, %v3854_v23, -inf  ;;  %v1837_v54 = vmax.f32 %v1829_v18, %v1836_v21  ;;  %v1843_v13 = vmax.f32 %v1835_v41, %v1842_v29 }
 0x85c   :  { %v1841_v55 = vmax.f32 %v1833_v16, %v1840_v1  ;;  %v1839_v26 = vmax.f32 %v1831_v20, %v1838_v61 }
 0x85e   :  { %v1846_v32 = vmax.f32 %v1839_v26, %v1841_v55 }
 0x865   :  { %v1680_v0 = vpop.permute.xlu0 %1679 }
 0x866   :  { %v1728_v14 = vadd.f32 %v1680_v0, %v3849_v3 }
 0x868   :  { %vm1752_vm0 = vcmp.gt.f32.partialorder %v1728_v14, 0.0  ;;  %v1776_v4 = vmul.f32 0.2, %v1728_v14 }
 0x86a   :  { %v1800_v62 = vsel %vm1752_vm0, %v1728_v14, %v1776_v4 }
 0x86b   :  { %v1844_v0 = vsel %vm1801_vm6, %v1800_v62, -inf }
 0x86c   :  { %v1845_v11 = vmax.f32 %v1837_v54, %v1844_v0 }
 0x86e   :  { %v1847_v15 = vmax.f32 %v1843_v13, %v1845_v11 }
 0x870   :  { %v1848_v27 = vmax.f32 %v1846_v32, %v1847_v15 }
 0x872   :  { %v1849_v63 = vrot.slane %v1848_v27, 4 }
 0x874   :  { %v1850_v50 = vmax.f32 %v1848_v27, %v1849_v63 }
 0x876   :  { %v1851_v42 = vrot.slane %v1850_v50, 2 }
 0x878   :  { %v1852_v38 = vmax.f32 %v1850_v50, %v1851_v42 }
 0x87a   :  { %v1853_v60 = vrot.slane %v1852_v38, 1 }
 0x87c   :  { %v3867_v3 = vmax.f32 %v1852_v38, %v1853_v60 }
 0x87e   :  { %v1878_v21 = vsub.f32 %v1800_v62, %v3867_v3  ;;  %v1870_v16 = vsub.f32 %v1792_v35, %v3867_v3  ;;  %v1869_v14 = vsub.f32 %v3829_v17, %v3867_v3  ;;  %v1867_v31 = vsub.f32 %v3809_v51, %v3867_v3 }
 0x87f   :  { %v1865_v13 = vsub.f32 %v3791_v53, %v3867_v3  ;;  %v1864_v32 = vsub.f32 %v3774_v44, %v3867_v3  ;;  %v1866_v19 = vsub.f32 %v3807_v22, %v3867_v3  ;;  %v1877_v35 = vsub.f32 %v1799_v7, %v3867_v3 }
 0x880   :  { %v1909_v26 = vmul.f32 1.442695, %v1870_v16  ;;  %v1907_v11 = vmul.f32 1.442695, %v1869_v14  ;;  %v1903_v60 = vmul.f32 1.442695, %v1867_v31  ;;  %v1863_v51 = vsub.f32 %v3768_v47, %v3867_v3 }
 0x881   :  { %v1925_v1 = vmul.f32 1.442695, %v1878_v21  ;;  %v1899_v17 = vmul.f32 1.442695, %v1865_v13  ;;  %v1868_v53 = vsub.f32 %v3824_v25, %v3867_v3  ;;  %v1897_v18 = vmul.f32 1.442695, %v1864_v32 }
 0x882   :  { %2712 = vpow2.f32 %v1909_v26  ;;  %v1901_v4 = vmul.f32 1.442695, %v1866_v19  ;;  %v1923_v44 = vmul.f32 1.442695, %v1877_v35  ;;  %v1895_v20 = vmul.f32 1.442695, %v1863_v51 }
 0x883   :  { %2714 = vpow2.f32 %v1907_v11  ;;  %v1905_v22 = vmul.f32 1.442695, %v1868_v53  ;;  %v1871_v62 = vsub.f32 %v3827_v28, %v3867_v3  ;;  %v1872_v63 = vsub.f32 %v3831_v56, %v3867_v3 }
 0x884   :  { %2716 = vpow2.f32 %v1903_v60  ;;  %v1862_v38 = vsub.f32 %v3766_v59, %v3867_v3  ;;  %v1861_v56 = vsub.f32 %v3764_v52, %v3867_v3  ;;  %v1860_v16 = vsub.f32 %v3748_v2, %v3867_v3 }
 0x885   :  { %2718 = vpow2.f32 %v1925_v1  ;;  %v1911_v21 = vmul.f32 1.442695, %v1871_v62  ;;  %v1913_v14 = vmul.f32 1.442695, %v1872_v63  ;;  %v1859_v59 = vsub.f32 %v3746_v6, %v3867_v3 }
 0x886   :  { %2720 = vpow2.f32 %v1899_v17  ;;  %v1893_v31 = vmul.f32 1.442695, %v1862_v38  ;;  %v1891_v13 = vmul.f32 1.442695, %v1861_v56  ;;  %v1889_v26 = vmul.f32 1.442695, %v1860_v16 }
 0x887   :  { %2722 = vpow2.f32 %v1897_v18  ;;  %v1857_v2 = vsub.f32 %v3756_v36, %v3867_v3  ;;  %v1887_v32 = vmul.f32 1.442695, %v1859_v59  ;;  %v1876_v17 = vsub.f32 %v3841_v46, %v3867_v3 }
 0x888   :  { %v3886_v29 = vpop.eup %2712  ;;  %2724 = vpow2.f32 %v1901_v4  ;;  %v1875_v36 = vsub.f32 %v3854_v23, %v3867_v3  ;;  %v1874_v51 = vsub.f32 %v3837_v48, %v3867_v3  ;;  %v1873_v46 = vsub.f32 %v3839_v45, %v3867_v3 }
 0x889   :  { %v3888_v7 = vpop.eup %2714  ;;  %2004 = vperm.xlu2 %2625, %v3886_v29   ;;  %2726 = vpow2.f32 %v1923_v44  ;;  %v1883_v1 = vmul.f32 1.442695, %v1857_v2  ;;  %v1921_v53 = vmul.f32 1.442695, %v1876_v17  ;;  %v1858_v23 = vsub.f32 %v3781_v57, %v3867_v3 }
 0x88a   :  { %v3891_v47 = vpop.eup %2716  ;;  %1999 = vperm.xlu1 %2624, %v3888_v7   ;;  %2728 = vpow2.f32 %v1895_v20  ;;  %v2148_v25 = vpack.c.bf16 %v3886_v29, %v3888_v7  ;;  %v1919_v18 = vmul.f32 1.442695, %v1875_v36  ;;  %v1917_v44 = vmul.f32 1.442695, %v1874_v51 }
 0x88b   :  { %v3896_v61 = vpop.eup %2718  ;;  %1989 = vperm.xlu0 %2626, %v3891_v47   ;;  %2730 = vpow2.f32 %v1905_v22  ;;  %v1915_v22 = vmul.f32 1.442695, %v1873_v46  ;;  %v1885_v48 = vmul.f32 1.442695, %v1858_v23  ;;  %v1855_v45 = vsub.f32 %v3752_v49, %v3867_v3 }
 0x88c   :  { %v3899_v54 = vpop.eup %2720  ;;  %2732 = vpow2.f32 %v1911_v21  ;;  %v1856_v21 = vsub.f32 %v3754_v12, %v3867_v3  ;;  %v4157_v49 = vmov 0  }
 0x88d   :  { %v3901_v41 = vpop.eup %2722  ;;  %2734 = vpow2.f32 %v1913_v14  ;;  %v1879_v16 = vmul.f32 1.442695, %v1855_v45  ;;  %v4162_v45 = vld [vmem:[#allocation14_spill] sm:$0xff] }
 0x88e   :  { %v3903_v55 = vpop.eup %2724  ;;  %2736 = vpow2.f32 %v1893_v31  ;;  %v1881_v56 = vmul.f32 1.442695, %v1856_v21 }
 0x88f   :  { %v3907_v0 = vpop.eup %2726  ;;  %v2146_v15 = vpack.c.bf16 %v3903_v55, %v3899_v54  ;;  %2738 = vpow2.f32 %v1891_v13 }
 0x890   :  { %v3911_v27 = vpop.eup %2728  ;;  %v2152_v50 = vpack.c.bf16 %v3896_v61, %v3907_v0  ;;  %2740 = vpow2.f32 %v1889_v26 }
 0x891   :  { %v3917_v42 = vpop.eup %2730  ;;  %1979 = vperm.xlu2 %2625, %v3899_v54   ;;  %v2145_v28 = vpack.c.bf16 %v3901_v41, %v3911_v27  ;;  %2742 = vpow2.f32 %v1887_v32 }
 0x892   :  { %1994 = vperm.xlu1 %2624, %v3917_v42   ;;  %v3935_v52 = vpop.eup %2732  ;;  %2744 = vpow2.f32 %v1883_v1  ;;  %v2147_v12 = vpack.c.bf16 %v3917_v42, %v3891_v47 }
 0x893   :  { %1974 = vperm.xlu0 %2626, %v3901_v41   ;;  %v3939_v11 = vpop.eup %2734  ;;  %2746 = vpow2.f32 %v1921_v53 }
 0x894   :  { %v2149_v60 = vpack.c.bf16 %v3939_v11, %v3935_v52  ;;  %v2737_v19 = vpop.eup %2736  ;;  %2748 = vpow2.f32 %v1919_v18 }
 0x895   :  { %v2739_v35 = vpop.eup %2738  ;;  %2750 = vpow2.f32 %v1917_v44  ;;  %v4158_v44 = vld [vmem:[#allocation8_spill] sm:$0xff] }
 0x896   :  { %v2741_v6 = vpop.eup %2740  ;;  %2752 = vpow2.f32 %v1915_v22  ;;  %v2144_v3 = vpack.c.bf16 %v2737_v19, %v2739_v35  ;;  %v4159_v22 = vld [vmem:[#allocation12_spill] sm:$0xff] }
 0x897   :  { %v2743_v4 = vpop.eup %2742  ;;  %2754 = vpow2.f32 %v1885_v48 }
 0x898   :  { %v2745_v20 = vpop.eup %2744  ;;  %2756 = vpow2.f32 %v1881_v56  ;;  %v2143_v47 = vpack.c.bf16 %v2741_v6, %v2743_v4 }
 0x899   :  { %1969 = vperm.xlu2 %2625, %v3911_v27   ;;  %v2747_v62 = vpop.eup %2746  ;;  %2758 = vpow2.f32 %v1879_v16 }
 0x89a   :  { %1984 = vperm.xlu1 %2624, %v3903_v55   ;;  %v2749_v63 = vpop.eup %2748 }
 0x89b   :  { %2039 = vperm.xlu0 %2626, %v3907_v0   ;;  %v2751_v38 = vpop.eup %2750  ;;  %v2151_v26 = vpack.c.bf16 %v2747_v62, %v2749_v63 }
 0x89c   :  { %v2753_v57 = vpop.eup %2752 }
 0x89d   :  { %v2755_v14 = vpop.eup %2754  ;;  %v2150_v7 = vpack.c.bf16 %v2751_v38, %v2753_v57 }
 0x89e   :  { %v2757_v31 = vpop.eup %2756 }
 0x89f   :  { %v2759_v13 = vpop.eup %2758 }
 0x8a0   :  { %v2141_v29 = vpack.c.bf16 %v2757_v31, %v2759_v13 }
 0x8a1   :  { %1964 = vperm.xlu2 %2625, %v2737_v19  }
 0x8a2   :  { %1959 = vperm.xlu1 %2624, %v2739_v35  }
 0x8a3   :  { %1954 = vperm.xlu0 %2626, %v2741_v6  }
 0x8a9   :  { %1949 = vperm.xlu2 %2625, %v2743_v4  }
 0x8aa   :  { %2044 = vperm.xlu1 %2624, %v3896_v61  }
 0x8ab   :  { %1939 = vperm.xlu0 %2626, %v2745_v20  }
 0x8b1   :  { %2034 = vperm.xlu2 %2625, %v2747_v62   ;;  %v4160_v62 = vld [vmem:[#allocation6_spill] sm:$0xff] }
 0x8b2   :  { %2029 = vperm.xlu1 %2624, %v2749_v63  }
 0x8b3   :  { %2024 = vperm.xlu0 %2626, %v2751_v38  }
 0x8b9   :  { %2019 = vperm.xlu2 %2625, %v2753_v57  }
 0x8ba   :  { %1944 = vperm.xlu1 %2624, %v2755_v14  }
 0x8bb   :  { %2009 = vperm.xlu0 %2626, %v3935_v52  }
 0x8c1   :  { %1934 = vperm.xlu2 %2625, %v2757_v31  }
 0x8c2   :  { %1929 = vperm.xlu1 %2624, %v2759_v13   ;;  %v4164_v13 = vld [vmem:[#allocation16_spill] sm:$0xff] }
 0x8c3   :  { %2177 = vrot.lane.b32.xlu0 %v2147_v12, %s2834_s2 }
 0x8c4   :  { %2628 = vset.pattern.permute.xlu0 %v4157_v49 }
 0x8c9   :  { %2179 = vrot.lane.b32.xlu2 %v2148_v25, %s2834_s2  ;;  %v2142_v25 = vpack.c.bf16 %v2755_v14, %v2745_v20  ;;  %v4163_v14 = vld [vmem:[#allocation5_spill] sm:$0xff] }
 0x8ca   :  { %2014 = vperm.xlu1 %2624, %v3939_v11   ;;  %2627 = vset.pattern.permute.xlu2 %v4157_v49 }
 0x8cb   :  { %2171 = vrot.lane.b32.xlu0 %v2144_v3, %s2834_s2 }
 0x8d1   :  { %2173 = vrot.lane.b32.xlu2 %v2145_v28, %s2834_s2 }
 0x8d2   :  { %2175 = vrot.lane.b32.xlu1 %v2146_v15, %s2834_s2 }
 0x8d3   :  { %2185 = vrot.lane.b32.xlu0 %v2151_v26, %s2834_s2  ;;  %2629 = vset.pattern.permute.xlu1 %v4157_v49 }
 0x8d9   :  { %2169 = vrot.lane.b32.xlu2 %v2143_v47, %s2834_s2  ;;  %v4165_v47 = vld [vmem:[#allocation11_spill] sm:$0xff] }
 0x8da   :  { %2187 = vrot.lane.b32.xlu1 %v2152_v50, %s2834_s2 }
 0x8db   :  { %2165 = vrot.lane.b32.xlu0 %v2141_v29, %s2834_s2 }
 0x8e1   :  { %2183 = vrot.lane.b32.xlu2 %v2150_v7, %s2834_s2  ;;  %v4166_v7 = vld [vmem:[#allocation10_spill] sm:$0xff] }
 0x8e2   :  { %2167 = vrot.lane.b32.xlu1 %v2142_v25, %s2834_s2 }
 0x8e3   :  { %v2005_v41 = vpop.permute.xlu2 %2004 }
 0x8e4   :  { %v2062_v27 = vmul.f32 %v2005_v41, %v3720_v33 }
 0x8ea   :  { %2181 = vrot.lane.b32.xlu1 %v2149_v60, %s2834_s2 }
 0x8eb   :  { %v1980_v54 = vpop.permute.xlu2 %1979 }
 0x8ec   :  { %v2057_v11 = vmul.f32 %v1980_v54, %v3707_v58 }
 0x8f3   :  { %v1970_v55 = vpop.permute.xlu2 %1969 }
 0x8f4   :  { %v2055_v6 = vmul.f32 %v1970_v55, %v3701_v30 }
 0x8fb   :  { %v1965_v0 = vpop.permute.xlu2 %1964 }
 0x8fc   :  { %v2000_v15 = vpop.permute.xlu1 %1999 }
 0x8fd   :  { %v2061_v42 = vmul.f32 %v2000_v15, %v3718_v8  ;;  %v1990_v28 = vpop.permute.xlu0 %1989 }
 0x8fe   :  { %v2059_v59 = vmul.f32 %v1990_v28, %v3714_v37  ;;  %v4168_v28 = vld [vmem:[#allocation15_spill] sm:$0xff] }
 0x8ff   :  { %v2078_v61 = vpack.c.bf16 %v2062_v27, %v2061_v42  ;;  %v4167_v27 = vld [vmem:[#allocation17_spill] sm:$0xff] }
 0x901   :  { %2083 = vmatpush.bf16.msra.mxu2 %v2078_v61 }
 0x903   :  { %v1950_v1 = vpop.permute.xlu2 %1949 }
 0x904   :  { %v1995_v50 = vpop.permute.xlu1 %1994  ;;  %v2051_v18 = vmul.f32 %v1950_v1, %v3688_v5  ;;  %v4161_v5 = vld [vmem:[#allocation13_spill] sm:$0xff] }
 0x905   :  { %v2060_v2 = vmul.f32 %v1995_v50, %v3716_v34  ;;  %v1975_v32 = vpop.permute.xlu0 %1974  ;;  %v2054_v34 = vmul.f32 %v1965_v0, %v3698_v40 }
 0x906   :  { %v2056_v8 = vmul.f32 %v1975_v32, %v3704_v9 }
 0x907   :  { %v2077_v19 = vpack.c.bf16 %v2060_v2, %v2059_v59  ;;  %v4169_v2 = vld [vmem:[#allocation21_spill] sm:$0xff] }
 0x908   :  { %v2075_v17 = vpack.c.bf16 %v2056_v8, %v2055_v6  ;;  %v4171_v6 = vld [vmem:[#allocation19_spill] sm:$0xff] }
 0x909   :  { %2084 = vmatpush.bf16.msra.mxu2 %v2077_v19 }
 0x90c   :  { %v1985_v52 = vpop.permute.xlu1 %1984 }
 0x90d   :  { %v2058_v60 = vmul.f32 %v1985_v52, %v3711_v10  ;;  %v2040_v33 = vpop.permute.xlu0 %2039  ;;  %v2035_v10 = vpop.permute.xlu2 %2034 }
 0x90e   :  { %v2069_v30 = vmul.f32 %v2040_v33, %v3812_v43  ;;  %v2068_v48 = vmul.f32 %v2035_v10, %v4159_v22  ;;  %v4170_v33 = vld [vmem:[#allocation20_spill] sm:$0xff] }
 0x90f   :  { %v2076_v35 = vpack.c.bf16 %v2058_v60, %v2057_v11 }
 0x911   :  { %2085 = vmatpush.bf16.msra.mxu2 %v2076_v35 }
 0x914   :  { %v1960_v37 = vpop.permute.xlu1 %1959 }
 0x915   :  { %v2053_v36 = vmul.f32 %v1960_v37, %v3694_v39  ;;  %v1955_v51 = vpop.permute.xlu0 %1954  ;;  %2086 = vmatpush.bf16.msra.mxu2 %v2075_v17  ;;  %v2020_v39 = vpop.permute.xlu2 %2019  ;;  %v4172_v17 = vld [vmem:[#allocation18_spill] sm:$0xff] }
 0x916   :  { %v2052_v58 = vmul.f32 %v1955_v51, %v3691_v24  ;;  %v2065_v56 = vmul.f32 %v2020_v39, %v4162_v45 }
 0x917   :  { %v2074_v53 = vpack.c.bf16 %v2054_v34, %v2053_v36 }
 0x918   :  { %v2073_v9 = vpack.c.bf16 %v2052_v58, %v2051_v18 }
 0x919   :  { %2087 = vmatpush.bf16.msra.mxu2 %v2074_v53 }
 0x91c   :  { %v2045_v4 = vpop.permute.xlu1 %2044 }
 0x91d   :  { %v2070_v20 = vmul.f32 %v2045_v4, %v4158_v44  ;;  %v1940_v46 = vpop.permute.xlu0 %1939  ;;  %2088 = vmatpush.bf16.msra.mxu2 %v2073_v9  ;;  %v1935_v16 = vpop.permute.xlu2 %1934 }
 0x91e   :  { %v2049_v31 = vmul.f32 %v1940_v46, %v4163_v14  ;;  %v2048_v29 = vmul.f32 %v1935_v16, %v4165_v47 }
 0x91f   :  { %v2082_v40 = vpack.c.bf16 %v2070_v20, %v2069_v30 }
 0x921   :  { %2116 = vmatpush.bf16.msra.mxu3 %v2082_v40 }
 0x924   :  { %v2030_v23 = vpop.permute.xlu1 %2029 }
 0x925   :  { %v2067_v24 = vmul.f32 %v2030_v23, %v4160_v62  ;;  %v2025_v63 = vpop.permute.xlu0 %2024  ;;  %v2180_v41 = vpop.permute.xlu2 %2179 }
 0x926   :  { %v2066_v21 = vmul.f32 %v2025_v63, %v4161_v5 }
 0x927   :  { %v2081_v38 = vpack.c.bf16 %v2068_v48, %v2067_v24 }
 0x928   :  { %v2080_v43 = vpack.c.bf16 %v2066_v21, %v2065_v56 }
 0x929   :  { %2117 = vmatpush.bf16.msra.mxu3 %v2081_v38 }
 0x92c   :  { %v1945_v57 = vpop.permute.xlu1 %1944 }
 0x92d   :  { %v2050_v12 = vmul.f32 %v1945_v57, %v4164_v13  ;;  %2118 = vmatpush.bf16.msra.mxu3 %v2080_v43  ;;  %v2010_v3 = vpop.permute.xlu0 %2009  ;;  %v2174_v50 = vpop.permute.xlu2 %2173 }
 0x92e   :  { %v2063_v42 = vmul.f32 %v2010_v3, %v4167_v27 }
 0x92f   :  { %v2072_v49 = vpack.c.bf16 %v2050_v12, %v2049_v31 }
 0x931   :  { %2089 = vmatpush.bf16.msra.mxu2 %v2072_v49 }
 0x934   :  { %v1930_v26 = vpop.permute.xlu1 %1929 }
 0x935   :  { %v2047_v25 = vmul.f32 %v1930_v26, %v4166_v7  ;;  %v2178_v55 = vpop.permute.xlu0 %2177  ;;  %v2170_v19 = vpop.permute.xlu2 %2169 }
 0x937   :  { %v2071_v54 = vpack.c.bf16 %v2048_v29, %v2047_v25 }
 0x939   :  { %2090 = vmatpush.bf16.msra.mxu2 %v2071_v54 }
 0x93c   :  { %v2015_v15 = vpop.permute.xlu1 %2014  ;;  %2588 = vmatmul.lmr.bf16.vlgmr.msra.gmra.8.mxu2 }
 0x93d   :  { %v2064_v61 = vmul.f32 %v2015_v15, %v4168_v28  ;;  %2201 = vmatpush.bf16.msra.mxu2 %v2180_v41  ;;  %v2172_v59 = vpop.permute.xlu0 %2171  ;;  %v2184_v60 = vpop.permute.xlu2 %2183 }
 0x93f   :  { %v2079_v0 = vpack.c.bf16 %v2064_v61, %v2063_v42 }
 0x941   :  { %2119 = vmatpush.bf16.msra.mxu3 %v2079_v0  ;;  %2202 = vmatpush.bf16.msra.mxu2 %v2178_v55 }
 0x944   :  { %2536 = vmatmul.msk.bf16.vlgmr.msra.gmra.mxu3 %vm244_vm1, %v4169_v2  ;;  %v2176_v32 = vpop.permute.xlu1 %2175  ;;  %2589 = vmatmul.lmr.bf16.gmra.8.mxu2 }
 0x945   :  { %2203 = vmatpush.bf16.msra.mxu2 %v2176_v32  ;;  %v2186_v11 = vpop.permute.xlu0 %2185 }
 0x949   :  { %2204 = vmatpush.bf16.msra.mxu2 %v2174_v50 }
 0x94c   :  { %v2188_v52 = vpop.permute.xlu1 %2187  ;;  %2590 = vmatmul.lmr.bf16.gmra.8.mxu2 }
 0x94d   :  { %2205 = vmatpush.bf16.msra.mxu2 %v2172_v59  ;;  %2234 = vmatpush.bf16.msrb.mxu3 %v2188_v52  ;;  %v2166_v8 = vpop.permute.xlu0 %2165 }
 0x951   :  { %2206 = vmatpush.bf16.msra.mxu2 %v2170_v19  ;;  %2235 = vmatpush.bf16.msrb.mxu3 %v2186_v11 }
 0x954   :  { %2537 = vmatmul.msk.bf16.gmra.mxu3 %vm244_vm1, %v4170_v33  ;;  %v2168_v1 = vpop.permute.xlu1 %2167  ;;  %2591 = vmatmul.lmr.bf16.gmra.8.mxu2 }
 0x955   :  { %2207 = vmatpush.bf16.msra.mxu2 %v2168_v1  ;;  %2236 = vmatpush.bf16.msrb.mxu3 %v2184_v60 }
 0x959   :  { %2208 = vmatpush.bf16.msra.mxu2 %v2166_v8 }
 0x95c   :  { %v2182_v35 = vpop.permute.xlu1 %2181  ;;  %2592 = vmatmul.lmr.bf16.gmra.8.mxu2 }
 0x95d   :  { %2237 = vmatpush.bf16.msrb.mxu3 %v2182_v35 }
 0x964   :  { %2538 = vmatmul.msk.bf16.gmra.mxu3 %vm244_vm1, %v4171_v6  ;;  %2593 = vmatmul.lmr.bf16.gmra.8.mxu2 }
 0x96c   :  { %2594 = vmatmul.lmr.bf16.gmra.8.mxu2 }
 0x974   :  { %2539 = vmatmul.msk.bf16.gmra.mxu3 %vm244_vm1, %v4172_v17  ;;  %2595 = vmatmul.lmr.bf16.gmra.8.mxu2 }
 0x97c   :  { %2596 = vmatmul.lmr.bf16.vlgmr.msra.gmra.8.mxu2 }
 0x984   :  { %2540 = vmatmul.msk.bf16.vlgmr.msrb.gmra.mxu3 %vm244_vm1, %v4169_v2  ;;  %2597 = vmatmul.lmr.bf16.gmra.8.mxu2 }
 0x98c   :  { %2598 = vmatmul.lmr.bf16.gmra.8.mxu2 }
 0x994   :  { %2541 = vmatmul.msk.bf16.gmra.mxu3 %vm244_vm1, %v4170_v33  ;;  %2599 = vmatmul.lmr.bf16.gmra.8.mxu2 }
 0x99c   :  { %2600 = vmatmul.lmr.bf16.gmra.8.mxu2 }
 0x9a4   :  { %2542 = vmatmul.msk.bf16.gmra.mxu3 %vm244_vm1, %v4171_v6  ;;  %2601 = vmatmul.lmr.bf16.gmra.8.mxu2 }
 0x9ac   :  { %2602 = vmatmul.lmr.bf16.gmra.8.mxu2 }
 0x9b4   :  { %2543 = vmatmul.msk.bf16.gmra.mxu3 %vm244_vm1, %v4172_v17  ;;  %2603 = vmatmul.lmr.bf16.gmra.8.mxu2 }
 0x9bf   :  { %v2092_v37 = vpop.f32.mrf.mxu2 }
 0x9c7   :  { %v2121_v34 = vpop.f32.mrf.mxu3  ;;  %v2094_v36 = vpop.f32.mrf.mxu2 }
 0x9c8   :  { %v4020_v51 = vadd.f32 %v2121_v34, %v2092_v37  ;;  %v2631_v37 = vld [vmem:[%s4056_s6] ss:$0 sm:$0xff]  ;;  %s2835_s6 = smov [#allocation2]  }
 0x9c9   :  { %s2346_s25 = sshll.u32 %s2835_s6, 4  ;;  %s2347_s25 = int_to_ptr.vmem [resolvable:$true] %s2346_s25 }
 0x9cf   :  { %v2123_v53 = vpop.f32.mrf.mxu3  ;;  %v2097_v58 = vpop.f32.mrf.mxu2 }
 0x9d0   :  { %v4022_v10 = vadd.f32 %v2123_v53, %v2094_v36 }
 0x9d7   :  { %v2126_v18 = vpop.f32.mrf.mxu3  ;;  %v2099_v9 = vpop.f32.mrf.mxu2 }
 0x9d8   :  { %v4024_v4 = vadd.f32 %v2126_v18, %v2097_v58 }
 0x9df   :  { %v2128_v30 = vpop.f32.mrf.mxu3  ;;  %v2102_v44 = vpop.f32.mrf.mxu2 }
 0x9e0   :  { %v4026_v20 = vadd.f32 %v2128_v30, %v2099_v9 }
 0x9e7   :  { %v2131_v46 = vpop.f32.mrf.mxu3  ;;  %v2104_v40 = vpop.f32.mrf.mxu2 }
 0x9e8   :  { %v4028_v39 = vadd.f32 %v2131_v46, %v2102_v44 }
 0x9ef   :  { %v2133_v23 = vpop.f32.mrf.mxu3  ;;  %v2107_v22 = vpop.f32.mrf.mxu2 }
 0x9f0   :  { %v4030_v48 = vadd.f32 %v2133_v23, %v2104_v40 }
 0x9f7   :  { %v2136_v62 = vpop.f32.mrf.mxu3  ;;  %v2109_v24 = vpop.f32.mrf.mxu2 }
 0x9f8   :  { %v4032_v63 = vadd.f32 %v2136_v62, %v2107_v22 }
 0x9ff   :  { %v2138_v38 = vpop.f32.mrf.mxu3  ;;  %v2210_v5 = vpop.f32.mrf.mxu2 }
 0xa00   :  { %v4034_v21 = vadd.f32 %v2138_v38, %v2109_v24 }
 0xa07   :  { %v2239_v45 = vpop.f32.mrf.mxu3  ;;  %v2212_v56 = vpop.f32.mrf.mxu2 }
 0xa08   :  { %v2240_v43 = vadd.f32 %v2239_v45, %v2210_v5 }
 0xa0a   :  { %v2259_v16 = vmax.f32 %v2240_v43, 1e-12 }
 0xa0c   :  { %2760 = vrcp.f32 %v2259_v16 }
 0xa0f   :  { %v2241_v57 = vpop.f32.mrf.mxu3  ;;  %v2215_v14 = vpop.f32.mrf.mxu2 }
 0xa10   :  { %v2242_v31 = vadd.f32 %v2241_v57, %v2212_v56 }
 0xa12   :  { %v2761_v13 = vpop.eup %2760  ;;  %v2260_v12 = vmax.f32 %v2242_v31, 1e-12 }
 0xa13   :  { %2277 = vperm.xlu2 %2627, %v2761_v13  }
 0xa14   :  { %2762 = vrcp.f32 %v2260_v12 }
 0xa17   :  { %v2244_v49 = vpop.f32.mrf.mxu3  ;;  %v2217_v3 = vpop.f32.mrf.mxu2 }
 0xa18   :  { %v2245_v26 = vadd.f32 %v2244_v49, %v2215_v14 }
 0xa1a   :  { %v2763_v47 = vpop.eup %2762  ;;  %v2261_v29 = vmax.f32 %v2245_v26, 1e-12 }
 0xa1b   :  { %2282 = vperm.xlu0 %2628, %v2763_v47  }
 0xa1c   :  { %2764 = vrcp.f32 %v2261_v29 }
 0xa1f   :  { %v2246_v7 = vpop.f32.mrf.mxu3  ;;  %v2220_v25 = vpop.f32.mrf.mxu2 }
 0xa20   :  { %v2247_v41 = vadd.f32 %v2246_v7, %v2217_v3 }
 0xa22   :  { %v2765_v54 = vpop.eup %2764  ;;  %v2262_v55 = vmax.f32 %v2247_v41, 1e-12 }
 0xa23   :  { %2287 = vperm.xlu1 %2629, %v2765_v54  }
 0xa24   :  { %2766 = vrcp.f32 %v2262_v55 }
 0xa27   :  { %v2249_v15 = vpop.f32.mrf.mxu3  ;;  %v2222_v42 = vpop.f32.mrf.mxu2 }
 0xa28   :  { %v2250_v27 = vadd.f32 %v2249_v15, %v2220_v25 }
 0xa2a   :  { %v2767_v28 = vpop.eup %2766  ;;  %v2263_v61 = vmax.f32 %v2250_v27, 1e-12 }
 0xa2b   :  { %2292 = vperm.xlu2 %2627, %v2767_v28  }
 0xa2c   :  { %2768 = vrcp.f32 %v2263_v61 }
 0xa2f   :  { %v2251_v0 = vpop.f32.mrf.mxu3  ;;  %v2225_v32 = vpop.f32.mrf.mxu2 }
 0xa30   :  { %v2252_v50 = vadd.f32 %v2251_v0, %v2222_v42 }
 0xa32   :  { %v2769_v59 = vpop.eup %2768  ;;  %v2264_v2 = vmax.f32 %v2252_v50, 1e-12 }
 0xa33   :  { %2297 = vperm.xlu1 %2629, %v2769_v59  }
 0xa34   :  { %2770 = vrcp.f32 %v2264_v2 }
 0xa37   :  { %v2254_v19 = vpop.f32.mrf.mxu3  ;;  %v2227_v33 = vpop.f32.mrf.mxu2 }
 0xa38   :  { %v2255_v52 = vadd.f32 %v2254_v19, %v2225_v32 }
 0xa3a   :  { %v2771_v11 = vpop.eup %2770  ;;  %v2265_v60 = vmax.f32 %v2255_v52, 1e-12 }
 0xa3b   :  { %2302 = vperm.xlu2 %2627, %v2771_v11  }
 0xa3c   :  { %2772 = vrcp.f32 %v2265_v60 }
 0xa3f   :  { %v2256_v1 = vpop.f32.mrf.mxu3 }
 0xa40   :  { %v2257_v8 = vadd.f32 %v2256_v1, %v2227_v33 }
 0xa42   :  { %v2773_v35 = vpop.eup %2772  ;;  %v2266_v6 = vmax.f32 %v2257_v8, 1e-12 }
 0xa43   :  { %2307 = vperm.xlu0 %2628, %v2773_v35  }
 0xa44   :  { %2774 = vrcp.f32 %v2266_v6 }
 0xa4a   :  { %v2775_v17 = vpop.eup %2774 }
 0xa4b   :  { %2312 = vperm.xlu1 %2629, %v2775_v17  }
 0xa6d   :  { %v2278_v34 = vpop.permute.xlu2 %2277 }
 0xa6e   :  { %v2315_v36 = vmul.f32 %v2278_v34, %v4020_v51 }
 0xa70   :  { %v2326_v53 = vadd.f32 %v2631_v37, %v2315_v36 }
 0xa72   :  { %2334 = vst [vmem:[#allocation2] sm:$0xff] %v2326_v53 }
 0xa85   :  { %v2293_v58 = vpop.permute.xlu2 %2292 }
 0xa86   :  { %v2318_v18 = vmul.f32 %v2293_v58, %v4026_v20 }
 0xa88   :  { %v2329_v9 = vadd.f32 %v2631_v37, %v2318_v18 }
 0xa8a   :  { %2337 = vst [vmem:[#allocation2 + $0x18] sm:$0xff] %v2329_v9 }
 0xa8d   :  { %v2283_v30 = vpop.permute.xlu0 %2282 }
 0xa8e   :  { %v2316_v44 = vmul.f32 %v2283_v30, %v4022_v10 }
 0xa90   :  { %v2327_v46 = vadd.f32 %v2631_v37, %v2316_v44 }
 0xa92   :  { %2335 = vst [vmem:[#allocation2 + $0x8] sm:$0xff] %v2327_v46 }
 0xa95   :  { %v2288_v40 = vpop.permute.xlu1 %2287  ;;  %v2303_v23 = vpop.permute.xlu2 %2302 }
 0xa96   :  { %v2317_v22 = vmul.f32 %v2288_v40, %v4024_v4  ;;  %v2320_v62 = vmul.f32 %v2303_v23, %v4030_v48 }
 0xa98   :  { %v2328_v24 = vadd.f32 %v2631_v37, %v2317_v22  ;;  %v2331_v51 = vadd.f32 %v2631_v37, %v2320_v62 }
 0xa9a   :  { %2336 = vst [vmem:[#allocation2 + $0x10] sm:$0xff] %v2328_v24 }
 0xa9b   :  { %2339 = vst [vmem:[#allocation2 + $0x28] sm:$0xff] %v2331_v51 }
 0xaa5   :  { %v2298_v38 = vpop.permute.xlu1 %2297 }
 0xaa6   :  { %v2319_v20 = vmul.f32 %v2298_v38, %v4028_v39 }
 0xaa8   :  { %v2330_v5 = vadd.f32 %v2631_v37, %v2319_v20 }
 0xaaa   :  { %2338 = vst [vmem:[#allocation2 + $0x20] sm:$0xff] %v2330_v5 }
 0xab5   :  { %v2308_v45 = vpop.permute.xlu0 %2307 }
 0xab6   :  { %v2321_v10 = vmul.f32 %v2308_v45, %v4032_v63 }
 0xab8   :  { %v2332_v56 = vadd.f32 %v2631_v37, %v2321_v10 }
 0xaba   :  { %2340 = vst [vmem:[#allocation2 + $0x30] sm:$0xff] %v2332_v56 }
 0xabd   :  { %v2313_v4 = vpop.permute.xlu1 %2312 }
 0xabe   :  { %v2322_v48 = vmul.f32 %v2313_v4, %v4034_v21 }
 0xac0   :  { %v2333_v43 = vadd.f32 %v2631_v37, %v2322_v48 }
 0xac2   :  { %2341 = vst [vmem:[#allocation2 + $0x38] sm:$0xff] %v2333_v43 }
 0xac3   :  { %2354 = dma.vmem_to_hbm [thread:$0]  %s2347_s25, 1024, %s2349_s28, [#allocation3], %s2836_s29, %s2836_s29, %s2837_s30  }
 0xac4   :  { %2824 = dma.done.wait [#allocation3], 1024  }
 0xac5   :  { %2825 = vsyncadd [#allocation3], 4294966272 }
 0xac6   :  { %2359 = vsyncpa [#allocation3], 1 }

</bundles_post_ra>
